<compile_context>
chip_gen: v6e
topology: v6e:2x2x1
jax: 0.10.0
libtpu: 0.0.40
codegen_flags: <defaults>
</compile_context>

<pallas_src>
import functools

import jax
import jax.numpy as jnp
from jax.experimental import pallas as pl
from jax.experimental.pallas import tpu as pltpu

_VMEM_LIMIT = 32 * 1024 * 1024  # safe on v5e/v6e (128 MiB) and v7x (64 MiB physical)


# -----------------------------------------------------------------------------
# Pallas kernels
# -----------------------------------------------------------------------------
def conv1x1_bn_relu_max_kernel(x_ref, w_ref, s_ref, b_ref, feat_ref, max_ref):
    """Stage 1: 1x1 conv (bf16 MXU, f32 acc) + folded BN + ReLU + channel max.

    x_ref: (1, 1, thw, Cin) bf16   w_ref: (1, Cin, Cout) bf16
    s_ref/b_ref: (1, 1, Cout) f32
    feat_ref: (1, 1, thw, Cout) bf16   max_ref: (1, 1, thw, 1) f32
    """
    x = x_ref[0, 0]                                        # (thw, Cin) bf16
    acc = jnp.dot(x, w_ref[0], preferred_element_type=jnp.float32)
    y = jnp.maximum(acc * s_ref[0] + b_ref[0], 0.0)        # f32 BN + ReLU
    feat_ref[0, 0] = y.astype(feat_ref.dtype)              # bf16 store (half traffic)
    max_ref[0, 0] = jnp.max(y, axis=-1, keepdims=True)


def fused_gate_conv_ca_kernel(feat_ref, gate_ref, w2_ref, s2_ref, b2_ref,
                              ca1_ref, ca2_ref, out_ref, acc_ref,
                              *, hw_valid, thw, masked):
    """Fused stages 3+4 + CA head.

    Per (batch b, row-tile j): for both branches compute
    (feat * (sa_cross + 1)) -> 1x1 conv (bf16 MXU) -> BN -> ReLU, add branches,
    reduce per-channel max into a VMEM accumulator across j.  On the last j,
    apply fc1 -> relu -> fc2 -> sigmoid and write the (1, C) CA output.
    `re`/`fus` never touch HBM.

    feat_ref: (2, 1, thw, C4) bf16   gate_ref: (2, 1, thw, 1) f32
    w2_ref: (2, C4, C) bf16          s2_ref/b2_ref: (2, 1, C) f32
    ca1_ref: (C, C//16) f32          ca2_ref: (C//16, C) f32
    out_ref: (1, 1, C) f32           acc_ref: VMEM (1, C) f32
    """
    j = pl.program_id(1)

    @pl.when(j == 0)
    def _():
        # fus is a sum of two post-ReLU terms (>= 0), so 0 is a valid identity.
        acc_ref[...] = jnp.zeros_like(acc_ref)

    def gated_branch(br):
        g = gate_ref[br, 0] + 1.0                          # x.mul(sa) + x == x*(sa+1)
        xg = (feat_ref[br, 0].astype(jnp.float32) * g).astype(jnp.bfloat16)
        acc = jnp.dot(xg, w2_ref[br], preferred_element_type=jnp.float32)
        return jnp.maximum(acc * s2_ref[br] + b2_ref[br], 0.0)

    fus = gated_branch(0) + gated_branch(1)                # (thw, C) f32, >= 0
    if masked:
        # Padded tail rows (only when thw does not divide H*W): force to 0 so
        # they cannot contaminate the pooled max (fus >= 0 everywhere).
        row = j * thw + jax.lax.broadcasted_iota(jnp.int32, fus.shape, 0)
        fus = jnp.where(row < hw_valid, fus, 0.0)
    acc_ref[...] = jnp.maximum(acc_ref[...],
                               jnp.max(fus, axis=0, keepdims=True))

    @pl.when(j == pl.num_programs(1) - 1)
    def _():
        h = jnp.maximum(
            jnp.dot(acc_ref[...], ca1_ref[...], preferred_element_type=jnp.float32),
            0.0)
        out_ref[0] = jax.nn.sigmoid(
            jnp.dot(h, ca2_ref[...], preferred_element_type=jnp.float32))


# -----------------------------------------------------------------------------
# Pallas wrappers
# -----------------------------------------------------------------------------
def _row_tile(hw, target=4096):
    """Row tile over the per-image spatial axis; prefer a divisor of H*W."""
    if hw <= target:
        return hw                       # full axis -> no padding, legal block dim
    for t in range(target, 7, -1):
        if t % 8 == 0 and hw % t == 0:
            return t
    return target                       # fall back: pad + mask in the fused kernel


def conv1x1_bn_relu_max(x, w, scale, bias, thw):
    """x: (2, B, HWp, Cin) bf16.  Returns (feat (2,B,HWp,Cout) bf16, max (2,B,HWp,1) f32)."""
    nb, B, hwp, cin = x.shape
    cout = w.shape[-1]
    nt = hwp // thw
    return pl.pallas_call(
        conv1x1_bn_relu_max_kernel,
        out_shape=(jax.ShapeDtypeStruct((nb, B, hwp, cout), jnp.bfloat16),
                   jax.ShapeDtypeStruct((nb, B, hwp, 1), jnp.float32)),
        grid=(nb, B, nt),
        in_specs=[pl.BlockSpec((1, 1, thw, cin), lambda br, b, j: (br, b, j, 0)),
                  pl.BlockSpec((1, cin, cout), lambda br, b, j: (br, 0, 0)),
                  pl.BlockSpec((1, 1, cout), lambda br, b, j: (br, 0, 0)),
                  pl.BlockSpec((1, 1, cout), lambda br, b, j: (br, 0, 0))],
        out_specs=(pl.BlockSpec((1, 1, thw, cout), lambda br, b, j: (br, b, j, 0)),
                   pl.BlockSpec((1, 1, thw, 1), lambda br, b, j: (br, b, j, 0))),
        compiler_params=pltpu.CompilerParams(
            dimension_semantics=("parallel", "parallel", "parallel"),
            vmem_limit_bytes=_VMEM_LIMIT),
    )(x, w, scale.reshape(nb, 1, cout), bias.reshape(nb, 1, cout))


def fused_gate_conv_ca(feat, gate, w2, scale, bias, w_ca1, w_ca2, hw_valid, thw):
    """Fused stage 3+4+CA.  feat: (2,B,HWp,C4) bf16; gate: (2,B,HWp,1) f32.

    Returns the CA sigmoid map, shape (B, C) f32.
    """
    nb, B, hwp, cin = feat.shape
    cout = w2.shape[-1]
    nt = hwp // thw
    kern = functools.partial(fused_gate_conv_ca_kernel,
                             hw_valid=hw_valid, thw=thw, masked=(hwp != hw_valid))
    out = pl.pallas_call(
        kern,
        out_shape=jax.ShapeDtypeStruct((B, 1, cout), jnp.float32),
        grid=(B, nt),
        in_specs=[pl.BlockSpec((nb, 1, thw, cin), lambda b, j: (0, b, j, 0)),
                  pl.BlockSpec((nb, 1, thw, 1), lambda b, j: (0, b, j, 0)),
                  pl.BlockSpec((nb, cin, cout), lambda b, j: (0, 0, 0)),
                  pl.BlockSpec((nb, 1, cout), lambda b, j: (0, 0, 0)),
                  pl.BlockSpec((nb, 1, cout), lambda b, j: (0, 0, 0)),
                  pl.BlockSpec(w_ca1.shape, lambda b, j: (0, 0)),
                  pl.BlockSpec(w_ca2.shape, lambda b, j: (0, 0))],
        out_specs=pl.BlockSpec((1, 1, cout), lambda b, j: (b, 0, 0)),
        scratch_shapes=[pltpu.VMEM((1, cout), jnp.float32)],
        compiler_params=pltpu.CompilerParams(
            dimension_semantics=("parallel", "arbitrary"),
            vmem_limit_bytes=_VMEM_LIMIT),
    )(feat, gate, w2, scale.reshape(nb, 1, cout), bias.reshape(nb, 1, cout),
      w_ca1, w_ca2)
    return out.reshape(B, cout)


# -----------------------------------------------------------------------------
# Plain-JAX glue
# -----------------------------------------------------------------------------
def resize_bilinear_align_corners(x, out_h, out_w):
    """F.interpolate(mode='bilinear', align_corners=True) on NHWC."""
    B, h, w, C = x.shape
    ys = jnp.linspace(0.0, h - 1.0, out_h) if out_h > 1 else jnp.zeros((out_h,), jnp.float32)
    xs = jnp.linspace(0.0, w - 1.0, out_w) if out_w > 1 else jnp.zeros((out_w,), jnp.float32)
    y0 = jnp.floor(ys).astype(jnp.int32)
    x0 = jnp.floor(xs).astype(jnp.int32)
    y1 = jnp.minimum(y0 + 1, h - 1)
    x1 = jnp.minimum(x0 + 1, w - 1)
    wy = (ys - y0.astype(jnp.float32))[None, :, None, None]
    wx = (xs - x0.astype(jnp.float32))[None, None, :, None]

    def g(yi, xi):
        return x[:, yi][:, :, xi]

    top = g(y0, x0) * (1.0 - wx) + g(y0, x1) * wx
    bot = g(y1, x0) * (1.0 - wx) + g(y1, x1) * wx
    return top * (1.0 - wy) + bot * wy


def sa_conv7(max_map, w7):
    """7x7 'same' conv + sigmoid on the tiny channel-max maps (both branches).

    max_map: (2, B, H, W) f32; w7: (2, 7, 7).  Done as one grouped lax.conv in
    the wrapper — the map has only B*H*W elements per branch, so a dedicated
    Pallas kernel is lane-starved and launch-overhead dominated (per review).
    """
    nb, B, H, W = max_map.shape
    x = jnp.transpose(max_map, (1, 0, 2, 3))               # (B, 2, H, W), channel=branch
    w = w7.reshape(nb, 1, 7, 7)                            # OIHW with groups=2
    y = jax.lax.conv_general_dilated(
        x, w, window_strides=(1, 1), padding=((3, 3), (3, 3)),
        dimension_numbers=("NCHW", "OIHW", "NCHW"), feature_group_count=nb)
    return jax.nn.sigmoid(jnp.transpose(y, (1, 0, 2, 3)))  # (2, B, H, W)


def fold_bn(gamma, beta, mean, var, eps=1e-5):
    scale = gamma / jnp.sqrt(var + eps)
    return scale, beta - mean * scale


def init_params(key, ch):
    """BatchNorm uses eval-mode (running-stat) semantics folded into scale/bias."""
    c4 = ch // 4
    ks = jax.random.split(key, 12)

    def nrm(k, shape, s=0.1):
        return jax.random.normal(k, shape, jnp.float32) * s

    def bn(k, c):
        k1, k2 = jax.random.split(k)
        gamma = 1.0 + 0.1 * jax.random.normal(k1, (c,), jnp.float32)
        beta = 0.1 * jax.random.normal(k2, (c,), jnp.float32)
        return fold_bn(gamma, beta, jnp.zeros((c,), jnp.float32),
                       jnp.ones((c,), jnp.float32))

    s1r, b1r = bn(ks[8], c4)
    s1s, b1s = bn(ks[9], c4)
    s2r, b2r = bn(ks[10], ch)
    s2s, b2s = bn(ks[11], ch)

    return {
        # branch-stacked parameters: index 0 = rgb path, index 1 = srgb path
        "w_conv1": jnp.stack([nrm(ks[0], (ch, c4)), nrm(ks[1], (ch, c4))]),
        "w_conv2": jnp.stack([nrm(ks[2], (c4, ch)), nrm(ks[3], (c4, ch))]),
        "w_sa": jnp.stack([nrm(ks[4], (7, 7)), nrm(ks[5], (7, 7))]),
        "w_ca1": nrm(ks[6], (ch, ch // 16)),
        "w_ca2": nrm(ks[7], (ch // 16, ch)),
        "bn1_scale": jnp.stack([s1r, s1s]), "bn1_bias": jnp.stack([b1r, b1s]),
        "bn2_scale": jnp.stack([s2r, s2s]), "bn2_bias": jnp.stack([b2r, b2s]),
    }


def dec4_forward(params, rgb, srgb, row_tile=4096):
    """DEC4.forward == CF.forward(rgb, srgb).

    Note: PyTorch DEC4.forward returns the undefined name `fus`; the only
    sensible semantics is returning the CF output (the CA sigmoid map),
    shape (B, C, 1, 1) in NCHW.
    """
    B, C, H, W = rgb.shape
    HW = H * W
    rgb_nhwc = jnp.transpose(rgb, (0, 2, 3, 1))
    srgb_nhwc = resize_bilinear_align_corners(jnp.transpose(srgb, (0, 2, 3, 1)), H, W)

    # Branch-stacked, channels-last, bf16 input stream (f32 accumulation in-kernel).
    x = jnp.stack([rgb_nhwc.reshape(B, HW, C),
                   srgb_nhwc.reshape(B, HW, C)]).astype(jnp.bfloat16)  # (2, B, HW, C)

    thw = _row_tile(HW, row_tile)
    hw_pad = (-HW) % thw
    if hw_pad:  # only when thw does not divide HW; tail rows are masked downstream
        x = jnp.pad(x, ((0, 0), (0, 0), (0, hw_pad), (0, 0)))

    # Stage 1: BasicConv2d(C -> C//4) + BN + ReLU + per-pixel channel max.
    feat, chan_max = conv1x1_bn_relu_max(
        x, params["w_conv1"].astype(jnp.bfloat16),
        params["bn1_scale"], params["bn1_bias"], thw)

    # Stage 2: SA (7x7 conv + sigmoid) on both channel-max maps (plain lax.conv).
    sa = sa_conv7(chan_max[:, :, :HW, 0].reshape(2, B, H, W), params["w_sa"])

    # Crossed gating (CF.forward): rgb gated by srgb_sa(srgb_) and vice versa.
    gate = jnp.flip(sa, axis=0).reshape(2, B, HW, 1)
    if hw_pad:
        gate = jnp.pad(gate, ((0, 0), (0, 0), (0, hw_pad), (0, 0)))

    # Stages 3+4 fused: gated 1x1 conv + BN + ReLU (both branches), add, spatial
    # channel-max reduction, CA FC head — `re`/`fus` never materialized in HBM.
    fus = fused_gate_conv_ca(
        feat, gate, params["w_conv2"].astype(jnp.bfloat16),
        params["bn2_scale"], params["bn2_bias"],
        params["w_ca1"], params["w_ca2"], HW, thw)          # (B, C)
    return fus.reshape(B, C, 1, 1)


if __name__ == "__main__":
    key = jax.random.PRNGKey(0)
    kp, k1, k2 = jax.random.split(key, 3)
    ch = 64  # ch_2; >= 64 so the CA reduction (ch // 16) stays >= 1
    params = init_params(kp, ch)
    rgb = jax.random.normal(k1, (2, ch, 16, 16), jnp.float32)
    srgb = jax.random.normal(k2, (2, ch, 8, 8), jnp.float32)  # upsampled to 16x16

    fwd = jax.jit(functools.partial(dec4_forward, params))
    out = fwd(rgb, srgb)
    jax.block_until_ready(out)
    assert out.shape == (2, ch, 1, 1) and out.dtype == jnp.float32
    print("KERNEL_OK")
</pallas_src>

<mosaic_0001>
module attributes {stable_mosaic.version = 11 : i64} {
  func.func @conv1x1_bn_relu_max_kernel(%arg0: i32, %arg1: i32, %arg2: i32, %arg3: memref<1x1x256x64xbf16, #tpu.memory_space<vmem>>, %arg4: memref<1x64x16xbf16, #tpu.memory_space<vmem>>, %arg5: memref<1x1x16xf32, #tpu.memory_space<vmem>>, %arg6: memref<1x1x16xf32, #tpu.memory_space<vmem>>, %arg7: memref<1x1x256x16xbf16, #tpu.memory_space<vmem>>, %arg8: memref<1x1x256x1xf32, #tpu.memory_space<vmem>>) attributes {dimension_semantics = [#tpu.dimension_semantics<parallel>, #tpu.dimension_semantics<parallel>, #tpu.dimension_semantics<parallel>], iteration_bounds = array<i64: 2, 2, 1>, scalar_prefetch = 0 : i64, scratch_operands = 0 : i64, tpu.core_type = #tpu.core_type<tc>, window_params = [{transform_indices = @transform_0, window_bounds = array<i64: 1, 1, 256, 64>}, {transform_indices = @transform_1, window_bounds = array<i64: 1, 64, 16>}, {transform_indices = @transform_2, window_bounds = array<i64: 1, 1, 16>}, {transform_indices = @transform_3, window_bounds = array<i64: 1, 1, 16>}, {transform_indices = @transform_4, window_bounds = array<i64: 1, 1, 256, 16>}, {transform_indices = @transform_5, window_bounds = array<i64: 1, 1, 256, 1>}]} {
    %c0 = arith.constant 0 : index
    %c0_0 = arith.constant 0 : index
    %c0_1 = arith.constant 0 : index
    %c0_2 = arith.constant 0 : index
    %0 = vector.load %arg3[%c0, %c0_0, %c0_1, %c0_2] : memref<1x1x256x64xbf16, #tpu.memory_space<vmem>>, vector<1x1x256x64xbf16>
    %1 = vector.shape_cast %0 : vector<1x1x256x64xbf16> to vector<256x64xbf16>
    %c0_3 = arith.constant 0 : index
    %c0_4 = arith.constant 0 : index
    %c0_5 = arith.constant 0 : index
    %2 = vector.load %arg4[%c0_3, %c0_4, %c0_5] : memref<1x64x16xbf16, #tpu.memory_space<vmem>>, vector<1x64x16xbf16>
    %3 = vector.shape_cast %2 : vector<1x64x16xbf16> to vector<64x16xbf16>
    %cst = arith.constant dense<0.000000e+00> : vector<256x16xf32>
    %4 = tpu.matmul %1, %3, %cst {dimension_numbers = #tpu.dot_dimension_numbers<[1], [0], [0], [1], [0, 0, 1, 1], [], []>} : vector<256x64xbf16>, vector<64x16xbf16>, vector<256x16xf32> -> vector<256x16xf32>
    %c0_6 = arith.constant 0 : index
    %c0_7 = arith.constant 0 : index
    %c0_8 = arith.constant 0 : index
    %5 = vector.load %arg5[%c0_6, %c0_7, %c0_8] : memref<1x1x16xf32, #tpu.memory_space<vmem>>, vector<1x1x16xf32>
    %6 = vector.shape_cast %5 : vector<1x1x16xf32> to vector<1x16xf32>
    %7 = vector.broadcast %6 : vector<1x16xf32> to vector<256x16xf32>
    %8 = arith.mulf %4, %7 : vector<256x16xf32>
    %c0_9 = arith.constant 0 : index
    %c0_10 = arith.constant 0 : index
    %c0_11 = arith.constant 0 : index
    %9 = vector.load %arg6[%c0_9, %c0_10, %c0_11] : memref<1x1x16xf32, #tpu.memory_space<vmem>>, vector<1x1x16xf32>
    %10 = vector.shape_cast %9 : vector<1x1x16xf32> to vector<1x16xf32>
    %11 = vector.broadcast %10 : vector<1x16xf32> to vector<256x16xf32>
    %12 = arith.addf %8, %11 : vector<256x16xf32>
    %cst_12 = arith.constant 0.000000e+00 : f32
    %13 = vector.broadcast %cst_12 : f32 to vector<256x16xf32>
    %14 = arith.maximumf %12, %13 : vector<256x16xf32>
    %15 = arith.truncf %14 : vector<256x16xf32> to vector<256x16xbf16>
    %c0_13 = arith.constant 0 : index
    %c0_14 = arith.constant 0 : index
    %c0_15 = arith.constant 0 : index
    %c0_16 = arith.constant 0 : index
    %16 = vector.load %arg7[%c0_13, %c0_14, %c0_15, %c0_16] : memref<1x1x256x16xbf16, #tpu.memory_space<vmem>>, vector<1x1x256x16xbf16>
    %17 = vector.shape_cast %16 : vector<1x1x256x16xbf16> to vector<256x16xbf16>
    %18 = vector.shape_cast %15 : vector<256x16xbf16> to vector<1x1x256x16xbf16>
    tpu.vector_store %arg7[%c0_13, %c0_14, %c0_15, %c0_16], %18 {strides = array<i32>} : memref<1x1x256x16xbf16, #tpu.memory_space<vmem>>, vector<1x1x256x16xbf16>,
    %cst_17 = arith.constant dense<0xFF800000> : vector<256xf32>
    %19 = vector.multi_reduction <maximumf>, %14, %cst_17 [1] : vector<256x16xf32> to vector<256xf32>
    %20 = vector.shape_cast %19 : vector<256xf32> to vector<256x1xf32>
    %c0_18 = arith.constant 0 : index
    %c0_19 = arith.constant 0 : index
    %c0_20 = arith.constant 0 : index
    %c0_21 = arith.constant 0 : index
    %21 = vector.load %arg8[%c0_18, %c0_19, %c0_20, %c0_21] : memref<1x1x256x1xf32, #tpu.memory_space<vmem>>, vector<1x1x256x1xf32>
    %22 = vector.shape_cast %21 : vector<1x1x256x1xf32> to vector<256x1xf32>
    %23 = vector.shape_cast %20 : vector<256x1xf32> to vector<1x1x256x1xf32>
    tpu.vector_store %arg8[%c0_18, %c0_19, %c0_20, %c0_21], %23 {strides = array<i32>} : memref<1x1x256x1xf32, #tpu.memory_space<vmem>>, vector<1x1x256x1xf32>,
    return
  }
  func.func @transform_0(%arg0: i32, %arg1: i32, %arg2: i32) -> (i32, i32, i32, i32) {
    %c0_i32 = arith.constant 0 : i32
    %c0_i32_0 = arith.constant 0 : i32
    return %arg0, %arg1, %arg2, %c0_i32 : i32, i32, i32, i32
  }
  func.func @transform_1(%arg0: i32, %arg1: i32, %arg2: i32) -> (i32, i32, i32) {
    %c0_i32 = arith.constant 0 : i32
    %c0_i32_0 = arith.constant 0 : i32
    %c0_i32_1 = arith.constant 0 : i32
    return %arg0, %c0_i32, %c0_i32_0 : i32, i32, i32
  }
  func.func @transform_2(%arg0: i32, %arg1: i32, %arg2: i32) -> (i32, i32, i32) {
    %c0_i32 = arith.constant 0 : i32
    %c0_i32_0 = arith.constant 0 : i32
    %c0_i32_1 = arith.constant 0 : i32
    return %arg0, %c0_i32, %c0_i32_0 : i32, i32, i32
  }
  func.func @transform_3(%arg0: i32, %arg1: i32, %arg2: i32) -> (i32, i32, i32) {
    %c0_i32 = arith.constant 0 : i32
    %c0_i32_0 = arith.constant 0 : i32
    %c0_i32_1 = arith.constant 0 : i32
    return %arg0, %c0_i32, %c0_i32_0 : i32, i32, i32
  }
  func.func @transform_4(%arg0: i32, %arg1: i32, %arg2: i32) -> (i32, i32, i32, i32) {
    %c0_i32 = arith.constant 0 : i32
    %c0_i32_0 = arith.constant 0 : i32
    return %arg0, %arg1, %arg2, %c0_i32 : i32, i32, i32, i32
  }
  func.func @transform_5(%arg0: i32, %arg1: i32, %arg2: i32) -> (i32, i32, i32, i32) {
    %c0_i32 = arith.constant 0 : i32
    %c0_i32_0 = arith.constant 0 : i32
    return %arg0, %arg1, %arg2, %c0_i32 : i32, i32, i32, i32
  }
}

module attributes {stable_mosaic.version = 11 : i64} {
  func.func @fused_gate_conv_ca_kernel(%arg0: i32, %arg1: i32, %arg2: memref<2x1x256x16xbf16, #tpu.memory_space<vmem>>, %arg3: memref<2x1x256x1xf32, #tpu.memory_space<vmem>>, %arg4: memref<2x16x64xbf16, #tpu.memory_space<vmem>>, %arg5: memref<2x1x64xf32, #tpu.memory_space<vmem>>, %arg6: memref<2x1x64xf32, #tpu.memory_space<vmem>>, %arg7: memref<64x4xf32, #tpu.memory_space<vmem>>, %arg8: memref<4x64xf32, #tpu.memory_space<vmem>>, %arg9: memref<1x1x64xf32, #tpu.memory_space<vmem>>, %arg10: memref<1x64xf32, #tpu.memory_space<vmem>>) attributes {dimension_semantics = [#tpu.dimension_semantics<parallel>, #tpu.dimension_semantics<arbitrary>], iteration_bounds = array<i64: 2, 1>, scalar_prefetch = 0 : i64, scratch_operands = 1 : i64, tpu.core_type = #tpu.core_type<tc>, window_params = [{transform_indices = @transform_0, window_bounds = array<i64: 2, 1, 256, 16>}, {transform_indices = @transform_1, window_bounds = array<i64: 2, 1, 256, 1>}, {pipeline_mode = #tpu.pipeline_mode<synchronous>, transform_indices = @transform_2, window_bounds = array<i64: 2, 16, 64>}, {pipeline_mode = #tpu.pipeline_mode<synchronous>, transform_indices = @transform_3, window_bounds = array<i64: 2, 1, 64>}, {pipeline_mode = #tpu.pipeline_mode<synchronous>, transform_indices = @transform_4, window_bounds = array<i64: 2, 1, 64>}, {pipeline_mode = #tpu.pipeline_mode<synchronous>, transform_indices = @transform_5, window_bounds = array<i64: 64, 4>}, {pipeline_mode = #tpu.pipeline_mode<synchronous>, transform_indices = @transform_6, window_bounds = array<i64: 4, 64>}, {transform_indices = @transform_7, window_bounds = array<i64: 1, 1, 64>}]} {
    %c0_i32 = arith.constant 0 : i32
    %0 = arith.cmpi eq, %arg1, %c0_i32 : i32
    %1 = arith.extui %0 : i1 to i32
    %c0_i32_0 = arith.constant 0 : i32
    %2 = arith.cmpi ne, %1, %c0_i32_0 : i32
    scf.if %2 {
      %cst_45 = arith.constant 0.000000e+00 : f32
      %58 = vector.broadcast %cst_45 : f32 to vector<1x64xf32>
      %c0_46 = arith.constant 0 : index
      %c0_47 = arith.constant 0 : index
      %59 = vector.load %arg10[%c0_46, %c0_47] : memref<1x64xf32, #tpu.memory_space<vmem>>, vector<1x64xf32>
      tpu.vector_store %arg10[%c0_46, %c0_47], %58 {strides = array<i32>} : memref<1x64xf32, #tpu.memory_space<vmem>>, vector<1x64xf32>,
    } else {
    }
    %c0 = arith.constant 0 : index
    %c0_1 = arith.constant 0 : index
    %c0_2 = arith.constant 0 : index
    %c0_3 = arith.constant 0 : index
    %3 = vector.load %arg3[%c0, %c0_1, %c0_2, %c0_3] : memref<2x1x256x1xf32, #tpu.memory_space<vmem>>, vector<1x1x256x1xf32>
    %4 = vector.shape_cast %3 : vector<1x1x256x1xf32> to vector<256x1xf32>
    %cst = arith.constant 1.000000e+00 : f32
    %5 = vector.broadcast %cst : f32 to vector<256x1xf32>
    %6 = arith.addf %4, %5 : vector<256x1xf32>
    %c0_4 = arith.constant 0 : index
    %c0_5 = arith.constant 0 : index
    %c0_6 = arith.constant 0 : index
    %c0_7 = arith.constant 0 : index
    %7 = vector.load %arg2[%c0_4, %c0_5, %c0_6, %c0_7] : memref<2x1x256x16xbf16, #tpu.memory_space<vmem>>, vector<1x1x256x16xbf16>
    %8 = vector.shape_cast %7 : vector<1x1x256x16xbf16> to vector<256x16xbf16>
    %9 = arith.extf %8 : vector<256x16xbf16> to vector<256x16xf32>
    %10 = vector.broadcast %6 : vector<256x1xf32> to vector<256x16xf32>
    %11 = arith.mulf %9, %10 : vector<256x16xf32>
    %12 = arith.truncf %11 : vector<256x16xf32> to vector<256x16xbf16>
    %c0_8 = arith.constant 0 : index
    %c0_9 = arith.constant 0 : index
    %c0_10 = arith.constant 0 : index
    %13 = vector.load %arg4[%c0_8, %c0_9, %c0_10] : memref<2x16x64xbf16, #tpu.memory_space<vmem>>, vector<1x16x64xbf16>
    %14 = vector.shape_cast %13 : vector<1x16x64xbf16> to vector<16x64xbf16>
    %cst_11 = arith.constant dense<0.000000e+00> : vector<256x64xf32>
    %15 = tpu.matmul %12, %14, %cst_11 {dimension_numbers = #tpu.dot_dimension_numbers<[1], [0], [0], [1], [0, 0, 1, 1], [], []>} : vector<256x16xbf16>, vector<16x64xbf16>, vector<256x64xf32> -> vector<256x64xf32>
    %c0_12 = arith.constant 0 : index
    %c0_13 = arith.constant 0 : index
    %c0_14 = arith.constant 0 : index
    %16 = vector.load %arg5[%c0_12, %c0_13, %c0_14] : memref<2x1x64xf32, #tpu.memory_space<vmem>>, vector<1x1x64xf32>
    %17 = vector.shape_cast %16 : vector<1x1x64xf32> to vector<1x64xf32>
    %18 = vector.broadcast %17 : vector<1x64xf32> to vector<256x64xf32>
    %19 = arith.mulf %15, %18 : vector<256x64xf32>
    %c0_15 = arith.constant 0 : index
    %c0_16 = arith.constant 0 : index
    %c0_17 = arith.constant 0 : index
    %20 = vector.load %arg6[%c0_15, %c0_16, %c0_17] : memref<2x1x64xf32, #tpu.memory_space<vmem>>, vector<1x1x64xf32>
    %21 = vector.shape_cast %20 : vector<1x1x64xf32> to vector<1x64xf32>
    %22 = vector.broadcast %21 : vector<1x64xf32> to vector<256x64xf32>
    %23 = arith.addf %19, %22 : vector<256x64xf32>
    %cst_18 = arith.constant 0.000000e+00 : f32
    %24 = vector.broadcast %cst_18 : f32 to vector<256x64xf32>
    %25 = arith.maximumf %23, %24 : vector<256x64xf32>
    %c1 = arith.constant 1 : index
    %c0_19 = arith.constant 0 : index
    %c0_20 = arith.constant 0 : index
    %c0_21 = arith.constant 0 : index
    %26 = vector.load %arg3[%c1, %c0_19, %c0_20, %c0_21] : memref<2x1x256x1xf32, #tpu.memory_space<vmem>>, vector<1x1x256x1xf32>
    %27 = vector.shape_cast %26 : vector<1x1x256x1xf32> to vector<256x1xf32>
    %cst_22 = arith.constant 1.000000e+00 : f32
    %28 = vector.broadcast %cst_22 : f32 to vector<256x1xf32>
    %29 = arith.addf %27, %28 : vector<256x1xf32>
    %c1_23 = arith.constant 1 : index
    %c0_24 = arith.constant 0 : index
    %c0_25 = arith.constant 0 : index
    %c0_26 = arith.constant 0 : index
    %30 = vector.load %arg2[%c1_23, %c0_24, %c0_25, %c0_26] : memref<2x1x256x16xbf16, #tpu.memory_space<vmem>>, vector<1x1x256x16xbf16>
    %31 = vector.shape_cast %30 : vector<1x1x256x16xbf16> to vector<256x16xbf16>
    %32 = arith.extf %31 : vector<256x16xbf16> to vector<256x16xf32>
    %33 = vector.broadcast %29 : vector<256x1xf32> to vector<256x16xf32>
    %34 = arith.mulf %32, %33 : vector<256x16xf32>
    %35 = arith.truncf %34 : vector<256x16xf32> to vector<256x16xbf16>
    %c1_27 = arith.constant 1 : index
    %c0_28 = arith.constant 0 : index
    %c0_29 = arith.constant 0 : index
    %36 = vector.load %arg4[%c1_27, %c0_28, %c0_29] : memref<2x16x64xbf16, #tpu.memory_space<vmem>>, vector<1x16x64xbf16>
    %37 = vector.shape_cast %36 : vector<1x16x64xbf16> to vector<16x64xbf16>
    %cst_30 = arith.constant dense<0.000000e+00> : vector<256x64xf32>
    %38 = tpu.matmul %35, %37, %cst_30 {dimension_numbers = #tpu.dot_dimension_numbers<[1], [0], [0], [1], [0, 0, 1, 1], [], []>} : vector<256x16xbf16>, vector<16x64xbf16>, vector<256x64xf32> -> vector<256x64xf32>
    %c1_31 = arith.constant 1 : index
    %c0_32 = arith.constant 0 : index
    %c0_33 = arith.constant 0 : index
    %39 = vector.load %arg5[%c1_31, %c0_32, %c0_33] : memref<2x1x64xf32, #tpu.memory_space<vmem>>, vector<1x1x64xf32>
    %40 = vector.shape_cast %39 : vector<1x1x64xf32> to vector<1x64xf32>
    %41 = vector.broadcast %40 : vector<1x64xf32> to vector<256x64xf32>
    %42 = arith.mulf %38, %41 : vector<256x64xf32>
    %c1_34 = arith.constant 1 : index
    %c0_35 = arith.constant 0 : index
    %c0_36 = arith.constant 0 : index
    %43 = vector.load %arg6[%c1_34, %c0_35, %c0_36] : memref<2x1x64xf32, #tpu.memory_space<vmem>>, vector<1x1x64xf32>
    %44 = vector.shape_cast %43 : vector<1x1x64xf32> to vector<1x64xf32>
    %45 = vector.broadcast %44 : vector<1x64xf32> to vector<256x64xf32>
    %46 = arith.addf %42, %45 : vector<256x64xf32>
    %cst_37 = arith.constant 0.000000e+00 : f32
    %47 = vector.broadcast %cst_37 : f32 to vector<256x64xf32>
    %48 = arith.maximumf %46, %47 : vector<256x64xf32>
    %49 = arith.addf %25, %48 : vector<256x64xf32>
    %c0_38 = arith.constant 0 : index
    %c0_39 = arith.constant 0 : index
    %50 = vector.load %arg10[%c0_38, %c0_39] : memref<1x64xf32, #tpu.memory_space<vmem>>, vector<1x64xf32>
    %cst_40 = arith.constant dense<0xFF800000> : vector<64xf32>
    %51 = vector.multi_reduction <maximumf>, %49, %cst_40 [0] : vector<256x64xf32> to vector<64xf32>
    %52 = vector.shape_cast %51 : vector<64xf32> to vector<1x64xf32>
    %53 = arith.maximumf %50, %52 : vector<1x64xf32>
    %c0_41 = arith.constant 0 : index
    %c0_42 = arith.constant 0 : index
    %54 = vector.load %arg10[%c0_41, %c0_42] : memref<1x64xf32, #tpu.memory_space<vmem>>, vector<1x64xf32>
    tpu.vector_store %arg10[%c0_41, %c0_42], %53 {strides = array<i32>} : memref<1x64xf32, #tpu.memory_space<vmem>>, vector<1x64xf32>,
    %c0_i32_43 = arith.constant 0 : i32
    %55 = arith.cmpi eq, %arg1, %c0_i32_43 : i32
    %56 = arith.extui %55 : i1 to i32
    %c0_i32_44 = arith.constant 0 : i32
    %57 = arith.cmpi ne, %56, %c0_i32_44 : i32
    scf.if %57 {
      %c0_45 = arith.constant 0 : index
      %c0_46 = arith.constant 0 : index
      %58 = vector.load %arg10[%c0_45, %c0_46] : memref<1x64xf32, #tpu.memory_space<vmem>>, vector<1x64xf32>
      %c0_47 = arith.constant 0 : index
      %c0_48 = arith.constant 0 : index
      %59 = vector.load %arg7[%c0_47, %c0_48] : memref<64x4xf32, #tpu.memory_space<vmem>>, vector<64x4xf32>
      %cst_49 = arith.constant dense<0.000000e+00> : vector<1x4xf32>
      %60 = tpu.matmul %58, %59, %cst_49 {dimension_numbers = #tpu.dot_dimension_numbers<[1], [0], [0], [1], [0, 0, 1, 1], [], []>} : vector<1x64xf32>, vector<64x4xf32>, vector<1x4xf32> -> vector<1x4xf32>
      %cst_50 = arith.constant 0.000000e+00 : f32
      %61 = vector.broadcast %cst_50 : f32 to vector<1x4xf32>
      %62 = arith.maximumf %60, %61 : vector<1x4xf32>
      %c0_51 = arith.constant 0 : index
      %c0_52 = arith.constant 0 : index
      %63 = vector.load %arg8[%c0_51, %c0_52] : memref<4x64xf32, #tpu.memory_space<vmem>>, vector<4x64xf32>
      %cst_53 = arith.constant dense<0.000000e+00> : vector<1x64xf32>
      %64 = tpu.matmul %62, %63, %cst_53 {dimension_numbers = #tpu.dot_dimension_numbers<[1], [0], [0], [1], [0, 0, 1, 1], [], []>} : vector<1x4xf32>, vector<4x64xf32>, vector<1x64xf32> -> vector<1x64xf32>
      %65 = arith.negf %64 : vector<1x64xf32>
      %66 = math.exp %65 : vector<1x64xf32>
      %cst_54 = arith.constant 1.000000e+00 : f32
      %67 = vector.broadcast %cst_54 : f32 to vector<1x64xf32>
      %68 = arith.addf %67, %66 : vector<1x64xf32>
      %69 = arith.divf %67, %68 : vector<1x64xf32>
      %c0_55 = arith.constant 0 : index
      %c0_56 = arith.constant 0 : index
      %c0_57 = arith.constant 0 : index
      %70 = vector.load %arg9[%c0_55, %c0_56, %c0_57] : memref<1x1x64xf32, #tpu.memory_space<vmem>>, vector<1x1x64xf32>
      %71 = vector.shape_cast %70 : vector<1x1x64xf32> to vector<1x64xf32>
      %72 = vector.shape_cast %69 : vector<1x64xf32> to vector<1x1x64xf32>
      tpu.vector_store %arg9[%c0_55, %c0_56, %c0_57], %72 {strides = array<i32>} : memref<1x1x64xf32, #tpu.memory_space<vmem>>, vector<1x1x64xf32>,
    } else {
    }
    return
  }
  func.func @transform_0(%arg0: i32, %arg1: i32) -> (i32, i32, i32, i32) {
    %c0_i32 = arith.constant 0 : i32
    %c0_i32_0 = arith.constant 0 : i32
    %c0_i32_1 = arith.constant 0 : i32
    return %c0_i32, %arg0, %arg1, %c0_i32_0 : i32, i32, i32, i32
  }
  func.func @transform_1(%arg0: i32, %arg1: i32) -> (i32, i32, i32, i32) {
    %c0_i32 = arith.constant 0 : i32
    %c0_i32_0 = arith.constant 0 : i32
    %c0_i32_1 = arith.constant 0 : i32
    return %c0_i32, %arg0, %arg1, %c0_i32_0 : i32, i32, i32, i32
  }
  func.func @transform_2(%arg0: i32, %arg1: i32) -> (i32, i32, i32) {
    %c0_i32 = arith.constant 0 : i32
    %c0_i32_0 = arith.constant 0 : i32
    %c0_i32_1 = arith.constant 0 : i32
    %c0_i32_2 = arith.constant 0 : i32
    return %c0_i32, %c0_i32_0, %c0_i32_1 : i32, i32, i32
  }
  func.func @transform_3(%arg0: i32, %arg1: i32) -> (i32, i32, i32) {
    %c0_i32 = arith.constant 0 : i32
    %c0_i32_0 = arith.constant 0 : i32
    %c0_i32_1 = arith.constant 0 : i32
    %c0_i32_2 = arith.constant 0 : i32
    return %c0_i32, %c0_i32_0, %c0_i32_1 : i32, i32, i32
  }
  func.func @transform_4(%arg0: i32, %arg1: i32) -> (i32, i32, i32) {
    %c0_i32 = arith.constant 0 : i32
    %c0_i32_0 = arith.constant 0 : i32
    %c0_i32_1 = arith.constant 0 : i32
    %c0_i32_2 = arith.constant 0 : i32
    return %c0_i32, %c0_i32_0, %c0_i32_1 : i32, i32, i32
  }
  func.func @transform_5(%arg0: i32, %arg1: i32) -> (i32, i32) {
    %c0_i32 = arith.constant 0 : i32
    %c0_i32_0 = arith.constant 0 : i32
    %c0_i32_1 = arith.constant 0 : i32
    return %c0_i32, %c0_i32_0 : i32, i32
  }
  func.func @transform_6(%arg0: i32, %arg1: i32) -> (i32, i32) {
    %c0_i32 = arith.constant 0 : i32
    %c0_i32_0 = arith.constant 0 : i32
    %c0_i32_1 = arith.constant 0 : i32
    return %c0_i32, %c0_i32_0 : i32, i32
  }
  func.func @transform_7(%arg0: i32, %arg1: i32) -> (i32, i32, i32) {
    %c0_i32 = arith.constant 0 : i32
    %c0_i32_0 = arith.constant 0 : i32
    %c0_i32_1 = arith.constant 0 : i32
    return %arg0, %c0_i32, %c0_i32_0 : i32, i32, i32
  }
}

</mosaic_0001>

<bundles_post_ra>
// kernel: dec4_forward.2
= control target key start
LH: loop header
LB: loop body
LE: loop exit
PB: predicated region body
PF: predicated region fallthrough
CT: control target
= control target key end

     0   :  { %s1663_s18 = smov 0   ;;  %s1665_s19 = smov 0   ;;  %s2006_s0 = inlined_call_operand.vmem [shape: bf16[2,2,256,64], index: 0, kind: input, shape index: {}]   ;;  %s2007_s1 = inlined_call_operand.vmem [shape: bf16[2,64,16], index: 1, kind: input, shape index: {}]   ;;  %s2008_s2 = inlined_call_operand.vmem [shape: f32[2,1,16], index: 2, kind: input, shape index: {}]   ;;  %s2009_s3 = inlined_call_operand.vmem [shape: f32[2,1,16], index: 3, kind: input, shape index: {}]   ;;  %s2010_s4 = inlined_call_operand.vmem [shape: bf16[2,2,256,16], index: 4, kind: output, shape index: {0}]   ;;  %s2011_s5 = inlined_call_operand.vmem [shape: f32[2,2,256,1], index: 5, kind: output, shape index: {1}]  }
   0x1   :  { %s1667_s20 = smov 0   ;;  %s1669_s21 = smov 0  }
   0x2   :  { %s1671_s22 = smov 0  }
   0x3 LB: > { %s31_s23 = sadd.s32 1, %s1623_s20  ;;  %s35_s24 = sadd.s32 1, %s1627_s21  ;;  %s1631_s22 = sphi %s1671_s22, %s16_s22   ;;  %s1627_s21 = sphi %s1669_s21, %s2015_s21   ;;  %s1623_s20 = sphi %s1667_s20, %s2014_s20   ;;  %s1619_s19 = sphi %s1665_s19, %s2013_s19   ;;  %s1615_s18 = sphi %s1663_s18, %s2012_s18  }
   0x4   : > { %p33_p0 = scmp.ge.s32.totalorder %s31_s23, 2  ;;  %p1348_p1 = scmp.ge.s32.totalorder %s1631_s22, 1 }
   0x5   : > { %p256_p2 = scmp.lt.s32.totalorder %s1631_s22, 5 }
   0x6   : > { %s2017_s23 = smov (%p33_p0, %s31_s23), 0  ;;  %s2019_s24 = smov (!%p33_p0, %s35_s24), %s1627_s21 }
   0x7   : > { %p257_p3 = pnand %p1348_p1, %p256_p2  ;;  %p37_p4 = scmp.ge.s32.totalorder %s2019_s24, 2 }
   0x8   : > { %p325_p5 = scmp.lt.s32.totalorder (!%p257_p3), %s1619_s19, 1  ;;  %p327_p6 = scmp.lt.s32.totalorder (!%p257_p3), %s1615_s18, 1 }
   0x9   : > { %s2021_s24 = smov (%p37_p4, %s2019_s24), 0  ;;  %260 = sbr.rel (%p257_p3) target bundleno = 434 (0x1b2), region = 36 }
   0xe   : > { %s2023_s19 = smov (!%p325_p5, %s1619_s19), 1  ;;  %s2025_s18 = smov (!%p327_p6, %s1615_s18), 1  ;;  %vm522_vm0 = vcmask 523264   ;;  %vm1003_vm1 = vcmask 130048   ;;  %vm970_vm2 = vcmask 125952   ;;  %vm1100_vm3 = vcmask 7168  }
   0xf   : > { %s1350_s25 = sshll.u32 %s2023_s19, 6  ;;  %s1432_s26 = sshll.u32 %s2023_s19, 5 }
  0x10   : > { %s1349_s27 = sshll.u32 %s2025_s18, 5  ;;  %s342_s30 = scalar_lea.vmem %s2007_s1, %s1432_s26 }
  0x11   : > { %s1700_s6 = sadd.s32 %s1350_s25, %s1349_s27  ;;  %v1573_v0 = vld [vmem:[%s342_s30 + $0x18] sm:$0xff]   ;;  %v1574_v1 = vld [vmem:[%s342_s30 + $0x10] sm:$0xff]   ;;  %v1575_v2 = vld [vmem:[%s342_s30 + $0x8] sm:$0xff]   ;;  %s345_s13 = scalar_lea.vmem %s2008_s2, %s2023_s19 }
  0x12   : > { %s1351_s7 = sshll.u32 %s1700_s6, 2  ;;  %1485 = vmatprep.subr.bf16.mxu0 %v1573_v0  ;;  %1525 = vmatprep.subr.bf16.mxu1 %v1573_v0  ;;  %v1576_v5 = vld [vmem:[%s342_s30] sm:$0xff]   ;;  %s348_s16 = scalar_lea.vmem %s2009_s3, %s2023_s19 }
  0x13   : > { %s1708_s10 = scalar_lea.vmem %s2006_s0, %s1351_s7  ;;  %1486 = vmatpush3.bf16.msra.mxu0 %v1573_v0  ;;  %1529 = vmatpush3.bf16.msra.mxu1 %v1573_v0  ;;  %v1750_v20 = vld [vmem:[%s345_s13] ss:$0 sm:$0xff]  ;;  %s1769_s19 = scalar_lea.vmem %s2010_s4, %s1351_s7 }
  0x14   : > { %1487 = vmatprep.subr.bf16.mxu0 %v1574_v1  ;;  %1526 = vmatprep.subr.bf16.mxu1 %v1574_v1  ;;  %v1577_v3 = vld [vmem:[%s1708_s10] sm:$0xff]   ;;  %v1579_v6 = vld [vmem:[%s1708_s10 + $0x8] sm:$0xff]   ;;  %v1581_v8 = vld [vmem:[%s1708_s10 + $0x10] sm:$0xff]   ;;  %s1359_s25 = sshll.u32 %s1700_s6, 3 }
  0x15   : > { %v1578_v4 = vld [vmem:[%s1708_s10 + $0x40] sm:$0xff]   ;;  %1493 = vmatprep.mubr.msk.bf16.mxu0 %vm522_vm0, %v1577_v3  ;;  %v1580_v7 = vld [vmem:[%s1708_s10 + $0x48] sm:$0xff]   ;;  %v1583_v9 = vld [vmem:[%s1708_s10 + $0x50] sm:$0xff]   ;;  %s1925_s28 = scalar_lea.vmem %s2011_s5, %s1359_s25 }
  0x16   : > { %1509 = vmatprep.mubr.msk.bf16.mxu1 %vm522_vm0, %v1578_v4  ;;  %v1582_v10 = vld [vmem:[%s1708_s10 + $0x18] sm:$0xff]   ;;  %v1585_v12 = vld [vmem:[%s1708_s10 + $0x20] sm:$0xff]   ;;  %v1586_v14 = vld [vmem:[%s1708_s10 + $0x28] sm:$0xff]  }
  0x17   : > { %1488 = vmatpush3.bf16.msra.mxu0 %v1574_v1  ;;  %1530 = vmatpush3.bf16.msra.mxu1 %v1574_v1  ;;  %v1584_v11 = vld [vmem:[%s1708_s10 + $0x58] sm:$0xff]   ;;  %v1587_v13 = vld [vmem:[%s1708_s10 + $0x60] sm:$0xff]   ;;  %v1588_v15 = vld [vmem:[%s1708_s10 + $0x68] sm:$0xff]  }
  0x18   : > { %1489 = vmatprep.subr.bf16.mxu0 %v1575_v2  ;;  %1527 = vmatprep.subr.bf16.mxu1 %v1575_v2  ;;  %v1589_v16 = vld [vmem:[%s1708_s10 + $0x30] sm:$0xff]   ;;  %v1590_v18 = vld [vmem:[%s1708_s10 + $0x38] sm:$0xff]   ;;  %v1752_v21 = vld [vmem:[%s348_s16] ss:$0 sm:$0xff] }
  0x19   : > { %v1591_v17 = vld [vmem:[%s1708_s10 + $0x70] sm:$0xff]   ;;  %v1592_v19 = vld [vmem:[%s1708_s10 + $0x78] sm:$0xff]  }
  0x1b   : > { %1490 = vmatpush3.bf16.msra.mxu0 %v1575_v2  ;;  %1531 = vmatpush3.bf16.msra.mxu1 %v1575_v2 }
  0x1c   : > { %1491 = vmatprep.subr.bf16.mxu0 %v1576_v5  ;;  %1528 = vmatprep.subr.bf16.mxu1 %v1576_v5 }
  0x1f   : > { %1492 = vmatpush3.bf16.msra.mxu0 %v1576_v5  ;;  %1532 = vmatpush3.bf16.msra.mxu1 %v1576_v5 }
  0x22   : > { %1494 = vmatmul.mubr.msk.bf16.vlgmr.msra.gmra.mxu0 %vm522_vm0, %v1579_v6  ;;  %1510 = vmatmul.mubr.msk.bf16.vlgmr.msra.gmra.mxu1 %vm522_vm0, %v1580_v7 }
  0x23   : > { %1497 = vmatprep.mubr.msk.bf16.mxu0 %vm522_vm0, %v1581_v8  ;;  %1513 = vmatprep.mubr.msk.bf16.mxu1 %vm522_vm0, %v1583_v9 }
  0x2a   : > { %1498 = vmatmul.mubr.msk.bf16.gmra.mxu0 %vm522_vm0, %v1582_v10  ;;  %1514 = vmatmul.mubr.msk.bf16.gmra.mxu1 %vm522_vm0, %v1584_v11 }
  0x2b   : > { %1501 = vmatprep.mubr.msk.bf16.mxu0 %vm522_vm0, %v1585_v12  ;;  %1517 = vmatprep.mubr.msk.bf16.mxu1 %vm522_vm0, %v1587_v13 }
  0x32   : > { %1502 = vmatmul.mubr.msk.bf16.gmra.mxu0 %vm522_vm0, %v1586_v14  ;;  %1518 = vmatmul.mubr.msk.bf16.gmra.mxu1 %vm522_vm0, %v1588_v15 }
  0x33   : > { %1505 = vmatprep.mubr.msk.bf16.mxu0 %vm522_vm0, %v1589_v16  ;;  %1521 = vmatprep.mubr.msk.bf16.mxu1 %vm522_vm0, %v1591_v17 }
  0x3a   : > { %1506 = vmatmul.mubr.msk.bf16.gmra.mxu0 %vm522_vm0, %v1590_v18  ;;  %1522 = vmatmul.mubr.msk.bf16.gmra.mxu1 %vm522_vm0, %v1592_v19 }
  0xe2   : > { %v1495_v22 = vpop.f32.mrf.mxu0  ;;  %v1511_v23 = vpop.f32.mrf.mxu1 }
  0xe3   : > { %v741_v24 = vmul.f32 %v1495_v22, %v1750_v20  ;;  %v757_v25 = vmul.f32 %v1511_v23, %v1750_v20 }
  0xe4   : > { %v605_v26 = vpop.f32.mrf.mxu0  ;;  %v669_v27 = vpop.f32.mrf.mxu1 }
  0xe5   : > { %v739_v28 = vmul.f32 %v1750_v20, %v605_v26  ;;  %v755_v29 = vmul.f32 %v1750_v20, %v669_v27  ;;  %v796_v30 = vadd.f32 %v1752_v21, %v757_v25  ;;  %v780_v31 = vadd.f32 %v1752_v21, %v741_v24 }
  0xe6   : > { %v1496_v32 = vpop.f32.mrf.mxu0  ;;  %v1512_v33 = vpop.f32.mrf.mxu1 }
  0xe7   : > { %v778_v34 = vadd.f32 %v1752_v21, %v739_v28  ;;  %v742_v35 = vmul.f32 %v1496_v32, %v1750_v20  ;;  %v758_v36 = vmul.f32 %v1512_v33, %v1750_v20  ;;  %v794_v37 = vadd.f32 %v1752_v21, %v755_v29 }
  0xe8   : > { %v608_v38 = vpop.f32.mrf.mxu0  ;;  %v672_v39 = vpop.f32.mrf.mxu1  ;;  %v828_v40 = vmax.f32 %v796_v30, 0.0  ;;  %v812_v41 = vmax.f32 %v780_v31, 0.0 }
  0xe9   : > { %v781_v42 = vadd.f32 %v1752_v21, %v742_v35  ;;  %v797_v43 = vadd.f32 %v1752_v21, %v758_v36  ;;  %v740_v44 = vmul.f32 %v1750_v20, %v608_v38  ;;  %v756_v45 = vmul.f32 %v1750_v20, %v672_v39 }
  0xea   : > { %v1058_v46 = vsel %vm1003_vm1, %v828_v40, -inf  ;;  %v1451_v47 = vpack.c.bf16 %v828_v40, %v828_v40  ;;  %v1010_v48 = vsel %vm1003_vm1, %v812_v41, -inf  ;;  %v1435_v49 = vpack.c.bf16 %v812_v41, %v812_v41  ;;  %v1499_v50 = vpop.f32.mrf.mxu0  ;;  %v1515_v51 = vpop.f32.mrf.mxu1 }
  0xeb   : > { %1059 = vmax.xlane.f32.xlu0 %v1058_v46  ;;  %1011 = vmax.xlane.f32.xlu1 %v1010_v48  ;;  %v745_v52 = vmul.f32 %v1499_v50, %v1750_v20  ;;  %v810_v53 = vmax.f32 %v778_v34, 0.0  ;;  %v761_v55 = vmul.f32 %v1515_v51, %v1750_v20  ;;  %v813_v57 = vmax.f32 %v781_v42, 0.0 }
  0xec   : > { %989 = vst.msk [vmem:[%s1769_s19 + $0x48] sm:$0xf] %vm970_vm2, %v1451_v47  ;;  %973 = vst.msk [vmem:[%s1769_s19 + $0x8] sm:$0xf] %vm970_vm2, %v1435_v49  ;;  %v621_v54 = vpop.f32.mrf.mxu0  ;;  %v685_v56 = vpop.f32.mrf.mxu1  ;;  %v826_v58 = vmax.f32 %v794_v37, 0.0  ;;  %v829_v59 = vmax.f32 %v797_v43, 0.0  ;;  %v779_v60 = vadd.f32 %v1752_v21, %v740_v44  ;;  %v795_v61 = vadd.f32 %v1752_v21, %v756_v45 }
  0xed   : > { %v784_v62 = vadd.f32 %v1752_v21, %v745_v52  ;;  %v1004_v63 = vsel %vm1003_vm1, %v810_v53, -inf  ;;  %v800_v0 = vadd.f32 %v1752_v21, %v761_v55  ;;  %v1433_v1 = vpack.c.bf16 %v810_v53, %v810_v53 }
  0xee   : > { %v1013_v2 = vsel %vm1003_vm1, %v813_v57, -inf  ;;  %v1436_v3 = vpack.c.bf16 %v813_v57, %v813_v57  ;;  %v1500_v4 = vpop.f32.mrf.mxu0  ;;  %v1516_v5 = vpop.f32.mrf.mxu1  ;;  %v743_v6 = vmul.f32 %v1750_v20, %v621_v54  ;;  %v759_v7 = vmul.f32 %v1750_v20, %v685_v56 }
  0xef   : > { %1005 = vmax.xlane.f32.xlu0 %v1004_v63  ;;  %1014 = vmax.xlane.f32.xlu1 %v1013_v2  ;;  %v746_v8 = vmul.f32 %v1500_v4, %v1750_v20  ;;  %971 = vst.msk [vmem:[%s1769_s19] sm:$0xf] %vm970_vm2, %v1433_v1  ;;  %v762_v10 = vmul.f32 %v1516_v5, %v1750_v20  ;;  %v1052_v13 = vsel %vm1003_vm1, %v826_v58, -inf  ;;  %v827_v18 = vmax.f32 %v795_v61, 0.0 }
  0xf0   : > { %974 = vst.msk [vmem:[%s1769_s19 + $0xc] sm:$0xf] %vm970_vm2, %v1436_v3  ;;  %v624_v9 = vpop.f32.mrf.mxu0  ;;  %v688_v11 = vpop.f32.mrf.mxu1  ;;  %v1449_v12 = vpack.c.bf16 %v826_v58, %v826_v58  ;;  %v1452_v14 = vpack.c.bf16 %v829_v59, %v829_v59  ;;  %v1061_v19 = vsel %vm1003_vm1, %v829_v59, -inf  ;;  %v811_v22 = vmax.f32 %v779_v60, 0.0 }
  0xf1   : > { %v785_v15 = vadd.f32 %v1752_v21, %v746_v8  ;;  %v744_v16 = vmul.f32 %v1750_v20, %v624_v9  ;;  %v760_v17 = vmul.f32 %v1750_v20, %v688_v11  ;;  %v816_v24 = vmax.f32 %v784_v62, 0.0 }
  0xf2   : > { %987 = vst.msk [vmem:[%s1769_s19 + $0x40] sm:$0xf] %vm970_vm2, %v1449_v12  ;;  %990 = vst.msk [vmem:[%s1769_s19 + $0x4c] sm:$0xf] %vm970_vm2, %v1452_v14  ;;  %v1503_v23 = vpop.f32.mrf.mxu0  ;;  %v1519_v25 = vpop.f32.mrf.mxu1  ;;  %v832_v26 = vmax.f32 %v800_v0, 0.0  ;;  %v782_v27 = vadd.f32 %v1752_v21, %v743_v6  ;;  %v798_v28 = vadd.f32 %v1752_v21, %v759_v7  ;;  %v1450_v29 = vpack.c.bf16 %v827_v18, %v827_v18 }
  0xf3   : > { %1053 = vmax.xlane.f32.xlu0 %v1052_v13  ;;  %1062 = vmax.xlane.f32.xlu1 %v1061_v19  ;;  %v783_v30 = vadd.f32 %v1752_v21, %v744_v16  ;;  %v801_v31 = vadd.f32 %v1752_v21, %v762_v10  ;;  %v1434_v32 = vpack.c.bf16 %v811_v22, %v811_v22  ;;  %v817_v38 = vmax.f32 %v785_v15, 0.0 }
  0xf4   : > { %v749_v33 = vmul.f32 %v1503_v23, %v1750_v20  ;;  %v637_v34 = vpop.f32.mrf.mxu0  ;;  %v701_v35 = vpop.f32.mrf.mxu1  ;;  %v799_v36 = vadd.f32 %v1752_v21, %v760_v17  ;;  %988 = vst.msk [vmem:[%s1769_s19 + $0x44] sm:$0xf] %vm970_vm2, %v1450_v29  ;;  %v1439_v37 = vpack.c.bf16 %v816_v24, %v816_v24  ;;  %v1055_v40 = vsel %vm1003_vm1, %v827_v18, -inf }
  0xf5   : > { %v747_v39 = vmul.f32 %v1750_v20, %v637_v34  ;;  %v1007_v41 = vsel %vm1003_vm1, %v811_v22, -inf  ;;  %972 = vst.msk [vmem:[%s1769_s19 + $0x4] sm:$0xf] %vm970_vm2, %v1434_v32  ;;  %v765_v43 = vmul.f32 %v1519_v25, %v1750_v20  ;;  %v1455_v44 = vpack.c.bf16 %v832_v26, %v832_v26 }
  0xf6   : > { %v1504_v42 = vpop.f32.mrf.mxu0  ;;  %v1520_v45 = vpop.f32.mrf.mxu1  ;;  %977 = vst.msk [vmem:[%s1769_s19 + $0x18] sm:$0xf] %vm970_vm2, %v1439_v37  ;;  %v1440_v46 = vpack.c.bf16 %v817_v38, %v817_v38  ;;  %v763_v48 = vmul.f32 %v1750_v20, %v701_v35  ;;  %v788_v49 = vadd.f32 %v1752_v21, %v749_v33  ;;  %v1022_v50 = vsel %vm1003_vm1, %v816_v24, -inf }
  0xf7   : > { %1056 = vmax.xlane.f32.xlu1 %v1055_v40  ;;  %1008 = vmax.xlane.f32.xlu0 %v1007_v41  ;;  %v750_v47 = vmul.f32 %v1504_v42, %v1750_v20  ;;  %v1025_v51 = vsel %vm1003_vm1, %v817_v38, -inf  ;;  %993 = vst.msk [vmem:[%s1769_s19 + $0x58] sm:$0xf] %vm970_vm2, %v1455_v44  ;;  %v833_v52 = vmax.f32 %v801_v31, 0.0  ;;  %v786_v55 = vadd.f32 %v1752_v21, %v747_v39 }
  0xf8   : > { %v640_v53 = vpop.f32.mrf.mxu0  ;;  %v704_v54 = vpop.f32.mrf.mxu1  ;;  %978 = vst.msk [vmem:[%s1769_s19 + $0x1c] sm:$0xf] %vm970_vm2, %v1440_v46  ;;  %v766_v57 = vmul.f32 %v1520_v45, %v1750_v20  ;;  %v814_v58 = vmax.f32 %v782_v27, 0.0  ;;  %v804_v59 = vadd.f32 %v1752_v21, %v765_v43  ;;  %v815_v62 = vmax.f32 %v783_v30, 0.0 }
  0xf9   : > { %v789_v56 = vadd.f32 %v1752_v21, %v750_v47  ;;  %v1456_v60 = vpack.c.bf16 %v833_v52, %v833_v52  ;;  %v748_v61 = vmul.f32 %v1750_v20, %v640_v53  ;;  %v802_v1 = vadd.f32 %v1752_v21, %v763_v48 }
  0xfa   : > { %v1507_v63 = vpop.f32.mrf.mxu0  ;;  %v1523_v0 = vpop.f32.mrf.mxu1  ;;  %v1070_v2 = vsel %vm1003_vm1, %v832_v26, -inf  ;;  %v764_v3 = vmul.f32 %v1750_v20, %v704_v54  ;;  %v1437_v4 = vpack.c.bf16 %v814_v58, %v814_v58  ;;  %v1073_v5 = vsel %vm1003_vm1, %v833_v52, -inf }
  0xfb   : > { %1023 = vmax.xlane.f32.xlu0 %v1022_v50  ;;  %1026 = vmax.xlane.f32.xlu1 %v1025_v51  ;;  %994 = vst.msk [vmem:[%s1769_s19 + $0x5c] sm:$0xf] %vm970_vm2, %v1456_v60  ;;  %v1438_v6 = vpack.c.bf16 %v815_v62, %v815_v62  ;;  %v830_v7 = vmax.f32 %v798_v28, 0.0  ;;  %v831_v8 = vmax.f32 %v799_v36, 0.0  ;;  %v805_v11 = vadd.f32 %v1752_v21, %v766_v57 }
  0xfc   : > { %v653_v9 = vpop.f32.mrf.mxu0  ;;  %v717_v10 = vpop.f32.mrf.mxu1  ;;  %975 = vst.msk [vmem:[%s1769_s19 + $0x10] sm:$0xf] %vm970_vm2, %v1437_v4  ;;  %v753_v12 = vmul.f32 %v1507_v63, %v1750_v20  ;;  %v820_v13 = vmax.f32 %v788_v49, 0.0  ;;  %v821_v14 = vmax.f32 %v789_v56, 0.0  ;;  %v787_v15 = vadd.f32 %v1752_v21, %v748_v61 }
  0xfd   : > { %976 = vst.msk [vmem:[%s1769_s19 + $0x14] sm:$0xf] %vm970_vm2, %v1438_v6  ;;  %v1453_v16 = vpack.c.bf16 %v830_v7, %v830_v7  ;;  %v1454_v17 = vpack.c.bf16 %v831_v8, %v831_v8  ;;  %v751_v18 = vmul.f32 %v1750_v20, %v653_v9  ;;  %v803_v23 = vadd.f32 %v1752_v21, %v764_v3 }
  0xfe   : > { %v1508_v19 = vpop.f32.mrf.mxu0  ;;  %v1524_v22 = vpop.f32.mrf.mxu1  ;;  %v1016_v24 = vsel %vm1003_vm1, %v814_v58, -inf  ;;  %v1019_v25 = vsel %vm1003_vm1, %v815_v62, -inf  ;;  %v1443_v26 = vpack.c.bf16 %v820_v13, %v820_v13  ;;  %v792_v27 = vadd.f32 %v1752_v21, %v753_v12 }
  0xff   : > { %1071 = vmax.xlane.f32.xlu0 %v1070_v2  ;;  %1074 = vmax.xlane.f32.xlu1 %v1073_v5  ;;  %991 = vst.msk [vmem:[%s1769_s19 + $0x50] sm:$0xf] %vm970_vm2, %v1453_v16  ;;  %992 = vst.msk [vmem:[%s1769_s19 + $0x54] sm:$0xf] %vm970_vm2, %v1454_v17  ;;  %v1444_v28 = vpack.c.bf16 %v821_v14, %v821_v14  ;;  %v754_v29 = vmul.f32 %v1508_v19, %v1750_v20  ;;  %v836_v32 = vmax.f32 %v804_v59, 0.0 }
 0x100   : > { %v769_v30 = vmul.f32 %v1523_v0, %v1750_v20  ;;  %v656_v31 = vpop.f32.mrf.mxu0  ;;  %981 = vst.msk [vmem:[%s1769_s19 + $0x28] sm:$0xf] %vm970_vm2, %v1443_v26  ;;  %v837_v33 = vmax.f32 %v805_v11, 0.0  ;;  %v767_v35 = vmul.f32 %v1750_v20, %v717_v10  ;;  %v790_v36 = vadd.f32 %v1752_v21, %v751_v18  ;;  %v720_v40 = vpop.f32.mrf.mxu1 }
 0x101   : > { %v752_v34 = vmul.f32 %v1750_v20, %v656_v31  ;;  %982 = vst.msk [vmem:[%s1769_s19 + $0x2c] sm:$0xf] %vm970_vm2, %v1444_v28  ;;  %v793_v37 = vadd.f32 %v1752_v21, %v754_v29  ;;  %v770_v38 = vmul.f32 %v1524_v22, %v1750_v20  ;;  %v818_v39 = vmax.f32 %v786_v55, 0.0 }
 0x102   : > { %v1064_v41 = vsel %vm1003_vm1, %v830_v7, -inf  ;;  %v1067_v42 = vsel %vm1003_vm1, %v831_v8, -inf  ;;  %v1459_v43 = vpack.c.bf16 %v836_v32, %v836_v32  ;;  %v1460_v44 = vpack.c.bf16 %v837_v33, %v837_v33 }
 0x103   : > { %1017 = vmax.xlane.f32.xlu0 %v1016_v24  ;;  %1020 = vmax.xlane.f32.xlu1 %v1019_v25  ;;  %v808_v45 = vadd.f32 %v1752_v21, %v769_v30  ;;  %v791_v46 = vadd.f32 %v1752_v21, %v752_v34  ;;  %v806_v47 = vadd.f32 %v1752_v21, %v767_v35  ;;  %v819_v50 = vmax.f32 %v787_v15, 0.0 }
 0x104   : > { %v809_v48 = vadd.f32 %v1752_v21, %v770_v38  ;;  %997 = vst.msk [vmem:[%s1769_s19 + $0x68] sm:$0xf] %vm970_vm2, %v1459_v43  ;;  %998 = vst.msk [vmem:[%s1769_s19 + $0x6c] sm:$0xf] %vm970_vm2, %v1460_v44  ;;  %v1441_v49 = vpack.c.bf16 %v818_v39, %v818_v39  ;;  %v768_v51 = vmul.f32 %v1750_v20, %v720_v40  ;;  %v834_v52 = vmax.f32 %v802_v1, 0.0 }
 0x105   : > { %v835_v53 = vmax.f32 %v803_v23, 0.0  ;;  %v824_v54 = vmax.f32 %v792_v27, 0.0  ;;  %v825_v55 = vmax.f32 %v793_v37, 0.0  ;;  %v822_v56 = vmax.f32 %v790_v36, 0.0 }
 0x106   : > { %979 = vst.msk [vmem:[%s1769_s19 + $0x20] sm:$0xf] %vm970_vm2, %v1441_v49  ;;  %v1442_v57 = vpack.c.bf16 %v819_v50, %v819_v50  ;;  %v807_v58 = vadd.f32 %v1752_v21, %v768_v51  ;;  %v1457_v59 = vpack.c.bf16 %v834_v52, %v834_v52  ;;  %v1034_v20 = vsel %vm1003_vm1, %v820_v13, -inf }
 0x107   : > { %1065 = vmax.xlane.f32.xlu0 %v1064_v41  ;;  %1068 = vmax.xlane.f32.xlu1 %v1067_v42  ;;  %v1458_v60 = vpack.c.bf16 %v835_v53, %v835_v53  ;;  %v1037_v61 = vsel %vm1003_vm1, %v821_v14, -inf  ;;  %v1447_v62 = vpack.c.bf16 %v824_v54, %v824_v54  ;;  %v1448_v63 = vpack.c.bf16 %v825_v55, %v825_v55 }
 0x108   : > { %980 = vst.msk [vmem:[%s1769_s19 + $0x24] sm:$0xf] %vm970_vm2, %v1442_v57  ;;  %995 = vst.msk [vmem:[%s1769_s19 + $0x60] sm:$0xf] %vm970_vm2, %v1457_v59  ;;  %v1445_v0 = vpack.c.bf16 %v822_v56, %v822_v56  ;;  %v823_v1 = vmax.f32 %v791_v46, 0.0  ;;  %v838_v21 = vmax.f32 %v806_v47, 0.0 }
 0x109   : > { %996 = vst.msk [vmem:[%s1769_s19 + $0x64] sm:$0xf] %vm970_vm2, %v1458_v60  ;;  %v839_v2 = vmax.f32 %v807_v58, 0.0  ;;  %985 = vst.msk [vmem:[%s1769_s19 + $0x38] sm:$0xf] %vm970_vm2, %v1447_v62  ;;  %v840_v3 = vmax.f32 %v808_v45, 0.0 }
 0x10a   : > { %986 = vst.msk [vmem:[%s1769_s19 + $0x3c] sm:$0xf] %vm970_vm2, %v1448_v63  ;;  %v841_v4 = vmax.f32 %v809_v48, 0.0  ;;  %983 = vst.msk [vmem:[%s1769_s19 + $0x30] sm:$0xf] %vm970_vm2, %v1445_v0  ;;  %v1446_v5 = vpack.c.bf16 %v823_v1, %v823_v1  ;;  %v1461_v6 = vpack.c.bf16 %v838_v21, %v838_v21  ;;  %v1082_v9 = vsel %vm1003_vm1, %v836_v32, -inf }
 0x10b   : > { %1035 = vmax.xlane.f32.xlu0 %v1034_v20  ;;  %1038 = vmax.xlane.f32.xlu1 %v1037_v61  ;;  %v1462_v7 = vpack.c.bf16 %v839_v2, %v839_v2  ;;  %v1463_v8 = vpack.c.bf16 %v840_v3, %v840_v3  ;;  %v1085_v10 = vsel %vm1003_vm1, %v837_v33, -inf  ;;  %v1028_v12 = vsel %vm1003_vm1, %v818_v39, -inf }
 0x10c   : > { %984 = vst.msk [vmem:[%s1769_s19 + $0x34] sm:$0xf] %vm970_vm2, %v1446_v5  ;;  %999 = vst.msk [vmem:[%s1769_s19 + $0x70] sm:$0xf] %vm970_vm2, %v1461_v6  ;;  %v1464_v11 = vpack.c.bf16 %v841_v4, %v841_v4  ;;  %v1031_v13 = vsel %vm1003_vm1, %v819_v50, -inf  ;;  %v1076_v14 = vsel %vm1003_vm1, %v834_v52, -inf }
 0x10d   : > { %1000 = vst.msk [vmem:[%s1769_s19 + $0x74] sm:$0xf] %vm970_vm2, %v1462_v7  ;;  %1001 = vst.msk [vmem:[%s1769_s19 + $0x78] sm:$0xf] %vm970_vm2, %v1463_v8  ;;  %v1079_v15 = vsel %vm1003_vm1, %v835_v53, -inf  ;;  %v1046_v16 = vsel %vm1003_vm1, %v824_v54, -inf }
 0x10e   : > { %1002 = vst.msk [vmem:[%s1769_s19 + $0x7c] sm:$0xf] %vm970_vm2, %v1464_v11  ;;  %v1049_v17 = vsel %vm1003_vm1, %v825_v55, -inf  ;;  %v1040_v18 = vsel %vm1003_vm1, %v822_v56, -inf  ;;  %v1043_v19 = vsel %vm1003_vm1, %v823_v1, -inf  ;;  %v1088_v22 = vsel %vm1003_vm1, %v838_v21, -inf }
 0x10f   : > { %1083 = vmax.xlane.f32.xlu0 %v1082_v9  ;;  %1086 = vmax.xlane.f32.xlu1 %v1085_v10  ;;  %v1091_v23 = vsel %vm1003_vm1, %v839_v2, -inf  ;;  %v1094_v24 = vsel %vm1003_vm1, %v840_v3, -inf  ;;  %v1097_v25 = vsel %vm1003_vm1, %v841_v4, -inf }
 0x113   : > { %1029 = vmax.xlane.f32.xlu0 %v1028_v12  ;;  %1032 = vmax.xlane.f32.xlu1 %v1031_v13 }
 0x117   : > { %1077 = vmax.xlane.f32.xlu0 %v1076_v14  ;;  %1080 = vmax.xlane.f32.xlu1 %v1079_v15 }
 0x11b   : > { %1047 = vmax.xlane.f32.xlu0 %v1046_v16  ;;  %1050 = vmax.xlane.f32.xlu1 %v1049_v17 }
 0x11f   : > { %1041 = vmax.xlane.f32.xlu0 %v1040_v18  ;;  %1044 = vmax.xlane.f32.xlu1 %v1043_v19 }
 0x123   : > { %1089 = vmax.xlane.f32.xlu0 %v1088_v22  ;;  %1092 = vmax.xlane.f32.xlu1 %v1091_v23 }
 0x127   : > { %1095 = vmax.xlane.f32.xlu0 %v1094_v24  ;;  %1098 = vmax.xlane.f32.xlu1 %v1097_v25 }
 0x174   : > { %v1060_v26 = vpop.xlane.xlu0 %1059  ;;  %v1012_v27 = vpop.xlane.xlu1 %1011 }
 0x175   : > { %1119 = vst.msk [vmem:[%s1925_s28 + $0x90] sm:$0xff] %vm1100_vm3, %v1060_v26  ;;  %1103 = vst.msk [vmem:[%s1925_s28 + $0x10] sm:$0xff] %vm1100_vm3, %v1012_v27 }
 0x178   : > { %v1006_v28 = vpop.xlane.xlu0 %1005  ;;  %v1015_v29 = vpop.xlane.xlu1 %1014 }
 0x179   : > { %1101 = vst.msk [vmem:[%s1925_s28] sm:$0xff] %vm1100_vm3, %v1006_v28  ;;  %1104 = vst.msk [vmem:[%s1925_s28 + $0x18] sm:$0xff] %vm1100_vm3, %v1015_v29 }
 0x17c   : > { %v1054_v30 = vpop.xlane.xlu0 %1053  ;;  %v1063_v31 = vpop.xlane.xlu1 %1062 }
 0x17d   : > { %1117 = vst.msk [vmem:[%s1925_s28 + $0x80] sm:$0xff] %vm1100_vm3, %v1054_v30  ;;  %1120 = vst.msk [vmem:[%s1925_s28 + $0x98] sm:$0xff] %vm1100_vm3, %v1063_v31 }
 0x180   : > { %v1057_v32 = vpop.xlane.xlu1 %1056  ;;  %v1009_v33 = vpop.xlane.xlu0 %1008 }
 0x181   : > { %1118 = vst.msk [vmem:[%s1925_s28 + $0x88] sm:$0xff] %vm1100_vm3, %v1057_v32  ;;  %1102 = vst.msk [vmem:[%s1925_s28 + $0x8] sm:$0xff] %vm1100_vm3, %v1009_v33 }
 0x184   : > { %v1024_v34 = vpop.xlane.xlu0 %1023  ;;  %v1027_v35 = vpop.xlane.xlu1 %1026 }
 0x185   : > { %1107 = vst.msk [vmem:[%s1925_s28 + $0x30] sm:$0xff] %vm1100_vm3, %v1024_v34  ;;  %1108 = vst.msk [vmem:[%s1925_s28 + $0x38] sm:$0xff] %vm1100_vm3, %v1027_v35 }
 0x188   : > { %v1072_v36 = vpop.xlane.xlu0 %1071  ;;  %v1075_v37 = vpop.xlane.xlu1 %1074 }
 0x189   : > { %1123 = vst.msk [vmem:[%s1925_s28 + $0xb0] sm:$0xff] %vm1100_vm3, %v1072_v36  ;;  %1124 = vst.msk [vmem:[%s1925_s28 + $0xb8] sm:$0xff] %vm1100_vm3, %v1075_v37 }
 0x18c   : > { %v1018_v38 = vpop.xlane.xlu0 %1017  ;;  %v1021_v39 = vpop.xlane.xlu1 %1020 }
 0x18d   : > { %1105 = vst.msk [vmem:[%s1925_s28 + $0x20] sm:$0xff] %vm1100_vm3, %v1018_v38  ;;  %1106 = vst.msk [vmem:[%s1925_s28 + $0x28] sm:$0xff] %vm1100_vm3, %v1021_v39 }
 0x190   : > { %v1066_v40 = vpop.xlane.xlu0 %1065  ;;  %v1069_v41 = vpop.xlane.xlu1 %1068 }
 0x191   : > { %1121 = vst.msk [vmem:[%s1925_s28 + $0xa0] sm:$0xff] %vm1100_vm3, %v1066_v40  ;;  %1122 = vst.msk [vmem:[%s1925_s28 + $0xa8] sm:$0xff] %vm1100_vm3, %v1069_v41 }
 0x194   : > { %v1036_v42 = vpop.xlane.xlu0 %1035  ;;  %v1039_v43 = vpop.xlane.xlu1 %1038 }
 0x195   : > { %1111 = vst.msk [vmem:[%s1925_s28 + $0x50] sm:$0xff] %vm1100_vm3, %v1036_v42  ;;  %1112 = vst.msk [vmem:[%s1925_s28 + $0x58] sm:$0xff] %vm1100_vm3, %v1039_v43 }
 0x198   : > { %v1084_v44 = vpop.xlane.xlu0 %1083  ;;  %v1087_v45 = vpop.xlane.xlu1 %1086 }
 0x199   : > { %1127 = vst.msk [vmem:[%s1925_s28 + $0xd0] sm:$0xff] %vm1100_vm3, %v1084_v44  ;;  %1128 = vst.msk [vmem:[%s1925_s28 + $0xd8] sm:$0xff] %vm1100_vm3, %v1087_v45 }
 0x19c   : > { %v1030_v46 = vpop.xlane.xlu0 %1029  ;;  %v1033_v47 = vpop.xlane.xlu1 %1032 }
 0x19d   : > { %1109 = vst.msk [vmem:[%s1925_s28 + $0x40] sm:$0xff] %vm1100_vm3, %v1030_v46  ;;  %1110 = vst.msk [vmem:[%s1925_s28 + $0x48] sm:$0xff] %vm1100_vm3, %v1033_v47 }
 0x1a0   : > { %v1078_v48 = vpop.xlane.xlu0 %1077  ;;  %v1081_v49 = vpop.xlane.xlu1 %1080 }
 0x1a1   : > { %1125 = vst.msk [vmem:[%s1925_s28 + $0xc0] sm:$0xff] %vm1100_vm3, %v1078_v48  ;;  %1126 = vst.msk [vmem:[%s1925_s28 + $0xc8] sm:$0xff] %vm1100_vm3, %v1081_v49 }
 0x1a4   : > { %v1048_v50 = vpop.xlane.xlu0 %1047  ;;  %v1051_v51 = vpop.xlane.xlu1 %1050 }
 0x1a5   : > { %1115 = vst.msk [vmem:[%s1925_s28 + $0x70] sm:$0xff] %vm1100_vm3, %v1048_v50  ;;  %1116 = vst.msk [vmem:[%s1925_s28 + $0x78] sm:$0xff] %vm1100_vm3, %v1051_v51 }
 0x1a8   : > { %v1042_v52 = vpop.xlane.xlu0 %1041  ;;  %v1045_v53 = vpop.xlane.xlu1 %1044 }
 0x1a9   : > { %1113 = vst.msk [vmem:[%s1925_s28 + $0x60] sm:$0xff] %vm1100_vm3, %v1042_v52  ;;  %1114 = vst.msk [vmem:[%s1925_s28 + $0x68] sm:$0xff] %vm1100_vm3, %v1045_v53 }
 0x1ac   : > { %v1090_v54 = vpop.xlane.xlu0 %1089  ;;  %v1093_v55 = vpop.xlane.xlu1 %1092 }
 0x1ad   : > { %1129 = vst.msk [vmem:[%s1925_s28 + $0xe0] sm:$0xff] %vm1100_vm3, %v1090_v54  ;;  %1130 = vst.msk [vmem:[%s1925_s28 + $0xe8] sm:$0xff] %vm1100_vm3, %v1093_v55 }
 0x1b0   : > { %v1096_v56 = vpop.xlane.xlu0 %1095  ;;  %v1099_v57 = vpop.xlane.xlu1 %1098 }
 0x1b1   : > { %1131 = vst.msk [vmem:[%s1925_s28 + $0xf0] sm:$0xff] %vm1100_vm3, %v1096_v56  ;;  %1132 = vst.msk [vmem:[%s1925_s28 + $0xf8] sm:$0xff] %vm1100_vm3, %v1099_v57 }
 0x1b2 PF: > { %s16_s22 = sadd.s32 1, %s1631_s22   ;;  %s2012_s18 = smov %s1623_s20 }
 0x1b3   : > { %p13_p7 = scmp.ge.s32.totalorder %s16_s22, 6   ;;  %s2013_s19 = smov %s1627_s21 }
 0x1b4   : > { %s2014_s20 = smov %s2017_s23  ;;  %s2015_s21 = smov %s2021_s24 }
 0x1b5   :  { %15 = sbr.rel (!%p13_p7) target bundleno = 3 (0x3), region = 87 }

// kernel: dec4_forward.3
= control target key start
LH: loop header
LB: loop body
LE: loop exit
PB: predicated region body
PF: predicated region fallthrough
CT: control target
= control target key end

     0   :  { %12 = vsyncpa [#allocation6], 0  ;;  %s4011_s0 = inlined_call_operand.vmem [shape: bf16[2,2,256,16], index: 0, kind: input, shape index: {}]   ;;  %s4012_s1 = inlined_call_operand.vmem [shape: f32[2,2,256,1], index: 1, kind: input, shape index: {}]   ;;  %s4013_s2 = inlined_call_operand.vmem [shape: bf16[2,16,64], index: 2, kind: input, shape index: {}]   ;;  %s4014_s3 = inlined_call_operand.vmem [shape: f32[2,1,64], index: 3, kind: input, shape index: {}]   ;;  %s4015_s4 = inlined_call_operand.vmem [shape: f32[2,1,64], index: 4, kind: input, shape index: {}]   ;;  %s4016_s5 = inlined_call_operand.vmem [shape: f32[64,4], index: 5, kind: input, shape index: {}]   ;;  %s4017_s6 = inlined_call_operand.vmem [shape: f32[4,64], index: 6, kind: input, shape index: {}]   ;;  %s4018_s7 = inlined_call_operand.hbm [shape: f32[2,1,64], index: 7, kind: output, shape index: {}]  }
   0x1   :  { %14 = vsyncpa [#allocation6 + $0x1], 0  ;;  %s3237_s24 = smov 0   ;;  %s3239_s25 = smov 0  }
   0x2   :  { %s3241_s26 = smov 0   ;;  %s3243_s27 = smov 0  }
   0x3   :  { %s3245_s28 = smov 0   ;;  %s3247_s29 = smov 0  }
   0x4 LB: > { %s2625_s30 = sadd.s32 4294967295, %s3191_s29   ;;  %s2626_s8 = sadd.s32 4294967294, %s3191_s29   ;;  %s3191_s29 = sphi %s3247_s29, %s20_s29   ;;  %s3187_s28 = sphi %s3245_s28, %s4026_s28   ;;  %s3183_s27 = sphi %s3243_s27, %s4025_s27   ;;  %s3179_s26 = sphi %s3241_s26, %s4024_s26   ;;  %s3175_s25 = sphi %s3239_s25, %s4023_s25   ;;  %s3171_s24 = sphi %s3237_s24, %s4022_s24  }
   0x5   : > { %s32_s9 = sadd.s32 1, %s3187_s28  ;;  %s41_s10 = sadd.s32 1, %s3179_s26 }
   0x6   : > { %p34_p0 = scmp.ge.s32.totalorder %s32_s9, 2  ;;  %p48_p1 = scmp.ne.s32.totalorder %s3179_s26, %s3175_s25 }
   0x7   : > { %p49_p2 = scmp.eq.s32.totalorder %s3191_s29, 0  ;;  %p211_p3 = scmp.eq.s32.totalorder %s2625_s30, 1 }
   0x8   : > { %s4028_s9 = smov (%p34_p0, %s32_s9), 0  ;;  %p216_p6 = scmp.ne.s32.totalorder %s3175_s25, %s3171_s24 }
   0x9   : > { %p3276_p4 = por %p49_p2, %p48_p1  ;;  %p3280_p5 = por %p211_p3, %p48_p1 }
   0xa   : > { %s36_s13 = ssub.s32 %s3187_s28, %s4028_s9  ;;  %p217_p8 = scmp.eq.s32.totalorder %s2626_s8, 1 }
   0xb   : > { %p39_p7 = scmp.eq.s32.totalorder %s36_s13, 0  ;;  %p2628_p10 = scmp.ge.s32.totalorder %s3191_s29, 2 }
   0xc   : > { %p3291_p9 = por %p217_p8, %p216_p6 }
   0xd   : > { %s3289_s14 = scalar_select %p39_p7, %s3179_s26, %s41_s10  }
   0xe   : > { %248 = sbr.rel (%p2628_p10) target bundleno = 75 (0x4b), region = 36 }
  0x13   : > { %251 = sbr.rel (!%p3276_p4) target bundleno = 39 (0x27), region = 40  ;;  %s253_s16 = sand.u32 (%p3276_p4), 1, %s3179_s26  }
  0x14   : > { %s2751_s17 = sshll.u32 (%p3276_p4), %s3187_s28, 7  ;;  %s2629_s18 = sshll.u32 (%p3276_p4), %s253_s16, 8 }
  0x15   : > { %s3305_s21 = scalar_lea.vmem (%p3276_p4), %s4011_s0, %s2751_s17  ;;  %s3310_s22 = scalar_lea.vmem (%p3276_p4), [#allocation3], %s2629_s18 }
  0x16   : > { %v277_v0 = vld [vmem:[%s3305_s21] sm:$0xff] (%p3276_p4)   ;;  %v281_v1 = vld [vmem:[%s3305_s21 + $0x8] sm:$0xff] (%p3276_p4)   ;;  %v285_v2 = vld [vmem:[%s3305_s21 + $0x10] sm:$0xff] (%p3276_p4)  }
  0x17   : > { %278 = vst [vmem:[%s3310_s22] sm:$0xff] (%p3276_p4), %v277_v0   ;;  %282 = vst [vmem:[%s3310_s22 + $0x8] sm:$0xff] (%p3276_p4), %v281_v1   ;;  %v289_v3 = vld [vmem:[%s3305_s21 + $0x18] sm:$0xff] (%p3276_p4)   ;;  %v293_v4 = vld [vmem:[%s3305_s21 + $0x20] sm:$0xff] (%p3276_p4)  }
  0x18   : > { %286 = vst [vmem:[%s3310_s22 + $0x10] sm:$0xff] %v285_v2   ;;  %v297_v5 = vld [vmem:[%s3305_s21 + $0x28] sm:$0xff]   ;;  %290 = vst [vmem:[%s3310_s22 + $0x18] sm:$0xff] %v289_v3   ;;  %v301_v6 = vld [vmem:[%s3305_s21 + $0x30] sm:$0xff]  }
  0x19   : > { %294 = vst [vmem:[%s3310_s22 + $0x20] sm:$0xff] %v293_v4   ;;  %298 = vst [vmem:[%s3310_s22 + $0x28] sm:$0xff] %v297_v5   ;;  %v305_v7 = vld [vmem:[%s3305_s21 + $0x38] sm:$0xff]   ;;  %v309_v8 = vld [vmem:[%s3305_s21 + $0x40] sm:$0xff]  }
  0x1a   : > { %302 = vst [vmem:[%s3310_s22 + $0x30] sm:$0xff] %v301_v6   ;;  %306 = vst [vmem:[%s3310_s22 + $0x38] sm:$0xff] %v305_v7   ;;  %v313_v9 = vld [vmem:[%s3305_s21 + $0x48] sm:$0xff]   ;;  %v317_v10 = vld [vmem:[%s3305_s21 + $0x50] sm:$0xff]  }
  0x1b   : > { %310 = vst [vmem:[%s3310_s22 + $0x40] sm:$0xff] %v309_v8   ;;  %v321_v11 = vld [vmem:[%s3305_s21 + $0x58] sm:$0xff]   ;;  %314 = vst [vmem:[%s3310_s22 + $0x48] sm:$0xff] %v313_v9   ;;  %v325_v12 = vld [vmem:[%s3305_s21 + $0x60] sm:$0xff]  }
  0x1c   : > { %318 = vst [vmem:[%s3310_s22 + $0x50] sm:$0xff] %v317_v10   ;;  %322 = vst [vmem:[%s3310_s22 + $0x58] sm:$0xff] %v321_v11   ;;  %v329_v13 = vld [vmem:[%s3305_s21 + $0x68] sm:$0xff]   ;;  %v333_v14 = vld [vmem:[%s3305_s21 + $0x70] sm:$0xff]  }
  0x1d   : > { %326 = vst [vmem:[%s3310_s22 + $0x60] sm:$0xff] %v325_v12   ;;  %330 = vst [vmem:[%s3310_s22 + $0x68] sm:$0xff] %v329_v13   ;;  %v337_v15 = vld [vmem:[%s3305_s21 + $0x78] sm:$0xff]   ;;  %v341_v16 = vld [vmem:[%s3305_s21 + $0x100] sm:$0xff]  }
  0x1e   : > { %334 = vst [vmem:[%s3310_s22 + $0x70] sm:$0xff] %v333_v14   ;;  %v345_v17 = vld [vmem:[%s3305_s21 + $0x108] sm:$0xff]   ;;  %338 = vst [vmem:[%s3310_s22 + $0x78] sm:$0xff] %v337_v15   ;;  %v349_v18 = vld [vmem:[%s3305_s21 + $0x110] sm:$0xff]  }
  0x1f   : > { %342 = vst [vmem:[%s3310_s22 + $0x80] sm:$0xff] %v341_v16   ;;  %346 = vst [vmem:[%s3310_s22 + $0x88] sm:$0xff] %v345_v17   ;;  %v353_v19 = vld [vmem:[%s3305_s21 + $0x118] sm:$0xff]   ;;  %v357_v20 = vld [vmem:[%s3305_s21 + $0x120] sm:$0xff]  }
  0x20   : > { %350 = vst [vmem:[%s3310_s22 + $0x90] sm:$0xff] %v349_v18   ;;  %354 = vst [vmem:[%s3310_s22 + $0x98] sm:$0xff] %v353_v19   ;;  %v361_v21 = vld [vmem:[%s3305_s21 + $0x128] sm:$0xff]   ;;  %v365_v22 = vld [vmem:[%s3305_s21 + $0x130] sm:$0xff]  }
  0x21   : > { %358 = vst [vmem:[%s3310_s22 + $0xa0] sm:$0xff] %v357_v20   ;;  %v369_v23 = vld [vmem:[%s3305_s21 + $0x138] sm:$0xff]   ;;  %362 = vst [vmem:[%s3310_s22 + $0xa8] sm:$0xff] %v361_v21   ;;  %v373_v24 = vld [vmem:[%s3305_s21 + $0x140] sm:$0xff]  }
  0x22   : > { %366 = vst [vmem:[%s3310_s22 + $0xb0] sm:$0xff] %v365_v22   ;;  %370 = vst [vmem:[%s3310_s22 + $0xb8] sm:$0xff] %v369_v23   ;;  %v377_v25 = vld [vmem:[%s3305_s21 + $0x148] sm:$0xff]   ;;  %v381_v26 = vld [vmem:[%s3305_s21 + $0x150] sm:$0xff]  }
  0x23   : > { %374 = vst [vmem:[%s3310_s22 + $0xc0] sm:$0xff] %v373_v24   ;;  %378 = vst [vmem:[%s3310_s22 + $0xc8] sm:$0xff] %v377_v25   ;;  %v385_v27 = vld [vmem:[%s3305_s21 + $0x158] sm:$0xff]   ;;  %v389_v28 = vld [vmem:[%s3305_s21 + $0x160] sm:$0xff]  }
  0x24   : > { %382 = vst [vmem:[%s3310_s22 + $0xd0] sm:$0xff] %v381_v26   ;;  %v393_v29 = vld [vmem:[%s3305_s21 + $0x168] sm:$0xff]   ;;  %386 = vst [vmem:[%s3310_s22 + $0xd8] sm:$0xff] %v385_v27   ;;  %v397_v30 = vld [vmem:[%s3305_s21 + $0x170] sm:$0xff]  }
  0x25   : > { %390 = vst [vmem:[%s3310_s22 + $0xe0] sm:$0xff] %v389_v28   ;;  %394 = vst [vmem:[%s3310_s22 + $0xe8] sm:$0xff] %v393_v29   ;;  %v401_v31 = vld [vmem:[%s3305_s21 + $0x178] sm:$0xff]  }
  0x26   : > { %398 = vst [vmem:[%s3310_s22 + $0xf0] sm:$0xff] %v397_v30   ;;  %402 = vst [vmem:[%s3310_s22 + $0xf8] sm:$0xff] %v401_v31  }
  0x27 PF: > { %556 = sbr.rel (!%p3276_p4) target bundleno = 75 (0x4b), region = 81  ;;  %s558_s23 = sand.u32 (%p3276_p4), 1, %s3179_s26  }
  0x28   : > { %s2752_s30 = sshll.u32 (%p3276_p4), %s3187_s28, 8  ;;  %s2632_s8 = sshll.u32 (%p3276_p4), %s558_s23, 9 }
  0x29   : > { %s3380_s16 = scalar_lea.vmem (%p3276_p4), %s4012_s1, %s2752_s30  ;;  %s3385_s11 = scalar_lea.vmem (%p3276_p4), [#allocation4], %s2632_s8 }
  0x2a   : > { %v720_v32 = vld [vmem:[%s3380_s16] sm:$0xff] (%p3276_p4)  ;;  %v722_v33 = vld [vmem:[%s3380_s16 + $0x8] sm:$0xff] (%p3276_p4)  ;;  %v724_v34 = vld [vmem:[%s3380_s16 + $0x10] sm:$0xff] (%p3276_p4) }
  0x2b   : > { %721 = vst [vmem:[%s3385_s11] sm:$0xff] (%p3276_p4), %v720_v32  ;;  %723 = vst [vmem:[%s3385_s11 + $0x8] sm:$0xff] (%p3276_p4), %v722_v33  ;;  %v726_v35 = vld [vmem:[%s3380_s16 + $0x18] sm:$0xff] (%p3276_p4)  ;;  %v728_v36 = vld [vmem:[%s3380_s16 + $0x20] sm:$0xff] (%p3276_p4) }
  0x2c   : > { %725 = vst [vmem:[%s3385_s11 + $0x10] sm:$0xff] %v724_v34  ;;  %v730_v37 = vld [vmem:[%s3380_s16 + $0x28] sm:$0xff]  ;;  %727 = vst [vmem:[%s3385_s11 + $0x18] sm:$0xff] %v726_v35  ;;  %v732_v38 = vld [vmem:[%s3380_s16 + $0x30] sm:$0xff] }
  0x2d   : > { %729 = vst [vmem:[%s3385_s11 + $0x20] sm:$0xff] %v728_v36  ;;  %731 = vst [vmem:[%s3385_s11 + $0x28] sm:$0xff] %v730_v37  ;;  %v734_v39 = vld [vmem:[%s3380_s16 + $0x38] sm:$0xff]  ;;  %v736_v40 = vld [vmem:[%s3380_s16 + $0x40] sm:$0xff] }
  0x2e   : > { %733 = vst [vmem:[%s3385_s11 + $0x30] sm:$0xff] %v732_v38  ;;  %735 = vst [vmem:[%s3385_s11 + $0x38] sm:$0xff] %v734_v39  ;;  %v738_v41 = vld [vmem:[%s3380_s16 + $0x48] sm:$0xff]  ;;  %v740_v42 = vld [vmem:[%s3380_s16 + $0x50] sm:$0xff] }
  0x2f   : > { %737 = vst [vmem:[%s3385_s11 + $0x40] sm:$0xff] %v736_v40  ;;  %v742_v43 = vld [vmem:[%s3380_s16 + $0x58] sm:$0xff]  ;;  %739 = vst [vmem:[%s3385_s11 + $0x48] sm:$0xff] %v738_v41  ;;  %v744_v44 = vld [vmem:[%s3380_s16 + $0x60] sm:$0xff] }
  0x30   : > { %741 = vst [vmem:[%s3385_s11 + $0x50] sm:$0xff] %v740_v42  ;;  %743 = vst [vmem:[%s3385_s11 + $0x58] sm:$0xff] %v742_v43  ;;  %v746_v45 = vld [vmem:[%s3380_s16 + $0x68] sm:$0xff]  ;;  %v748_v46 = vld [vmem:[%s3380_s16 + $0x70] sm:$0xff] }
  0x31   : > { %745 = vst [vmem:[%s3385_s11 + $0x60] sm:$0xff] %v744_v44  ;;  %747 = vst [vmem:[%s3385_s11 + $0x68] sm:$0xff] %v746_v45  ;;  %v750_v47 = vld [vmem:[%s3380_s16 + $0x78] sm:$0xff]  ;;  %v752_v48 = vld [vmem:[%s3380_s16 + $0x80] sm:$0xff] }
  0x32   : > { %749 = vst [vmem:[%s3385_s11 + $0x70] sm:$0xff] %v748_v46  ;;  %v754_v49 = vld [vmem:[%s3380_s16 + $0x88] sm:$0xff]  ;;  %751 = vst [vmem:[%s3385_s11 + $0x78] sm:$0xff] %v750_v47  ;;  %v756_v50 = vld [vmem:[%s3380_s16 + $0x90] sm:$0xff] }
  0x33   : > { %753 = vst [vmem:[%s3385_s11 + $0x80] sm:$0xff] %v752_v48  ;;  %755 = vst [vmem:[%s3385_s11 + $0x88] sm:$0xff] %v754_v49  ;;  %v758_v51 = vld [vmem:[%s3380_s16 + $0x98] sm:$0xff]  ;;  %v760_v52 = vld [vmem:[%s3380_s16 + $0xa0] sm:$0xff] }
  0x34   : > { %757 = vst [vmem:[%s3385_s11 + $0x90] sm:$0xff] %v756_v50  ;;  %759 = vst [vmem:[%s3385_s11 + $0x98] sm:$0xff] %v758_v51  ;;  %v762_v53 = vld [vmem:[%s3380_s16 + $0xa8] sm:$0xff]  ;;  %v764_v54 = vld [vmem:[%s3380_s16 + $0xb0] sm:$0xff] }
  0x35   : > { %761 = vst [vmem:[%s3385_s11 + $0xa0] sm:$0xff] %v760_v52  ;;  %v766_v55 = vld [vmem:[%s3380_s16 + $0xb8] sm:$0xff]  ;;  %763 = vst [vmem:[%s3385_s11 + $0xa8] sm:$0xff] %v762_v53  ;;  %v768_v56 = vld [vmem:[%s3380_s16 + $0xc0] sm:$0xff] }
  0x36   : > { %765 = vst [vmem:[%s3385_s11 + $0xb0] sm:$0xff] %v764_v54  ;;  %767 = vst [vmem:[%s3385_s11 + $0xb8] sm:$0xff] %v766_v55  ;;  %v770_v57 = vld [vmem:[%s3380_s16 + $0xc8] sm:$0xff]  ;;  %v772_v58 = vld [vmem:[%s3380_s16 + $0xd0] sm:$0xff] }
  0x37   : > { %769 = vst [vmem:[%s3385_s11 + $0xc0] sm:$0xff] %v768_v56  ;;  %771 = vst [vmem:[%s3385_s11 + $0xc8] sm:$0xff] %v770_v57  ;;  %v774_v59 = vld [vmem:[%s3380_s16 + $0xd8] sm:$0xff]  ;;  %v776_v60 = vld [vmem:[%s3380_s16 + $0xe0] sm:$0xff] }
  0x38   : > { %773 = vst [vmem:[%s3385_s11 + $0xd0] sm:$0xff] %v772_v58  ;;  %v778_v61 = vld [vmem:[%s3380_s16 + $0xe8] sm:$0xff]  ;;  %775 = vst [vmem:[%s3385_s11 + $0xd8] sm:$0xff] %v774_v59  ;;  %v780_v62 = vld [vmem:[%s3380_s16 + $0xf0] sm:$0xff] }
  0x39   : > { %777 = vst [vmem:[%s3385_s11 + $0xe0] sm:$0xff] %v776_v60  ;;  %779 = vst [vmem:[%s3385_s11 + $0xe8] sm:$0xff] %v778_v61  ;;  %v782_v63 = vld [vmem:[%s3380_s16 + $0xf8] sm:$0xff]  ;;  %v784_v0 = vld [vmem:[%s3380_s16 + $0x200] sm:$0xff] }
  0x3a   : > { %781 = vst [vmem:[%s3385_s11 + $0xf0] sm:$0xff] %v780_v62  ;;  %783 = vst [vmem:[%s3385_s11 + $0xf8] sm:$0xff] %v782_v63  ;;  %v786_v1 = vld [vmem:[%s3380_s16 + $0x208] sm:$0xff]  ;;  %v788_v2 = vld [vmem:[%s3380_s16 + $0x210] sm:$0xff] }
  0x3b   : > { %785 = vst [vmem:[%s3385_s11 + $0x100] sm:$0xff] %v784_v0  ;;  %v790_v3 = vld [vmem:[%s3380_s16 + $0x218] sm:$0xff]  ;;  %787 = vst [vmem:[%s3385_s11 + $0x108] sm:$0xff] %v786_v1  ;;  %v792_v4 = vld [vmem:[%s3380_s16 + $0x220] sm:$0xff] }
  0x3c   : > { %789 = vst [vmem:[%s3385_s11 + $0x110] sm:$0xff] %v788_v2  ;;  %791 = vst [vmem:[%s3385_s11 + $0x118] sm:$0xff] %v790_v3  ;;  %v794_v5 = vld [vmem:[%s3380_s16 + $0x228] sm:$0xff]  ;;  %v796_v6 = vld [vmem:[%s3380_s16 + $0x230] sm:$0xff] }
  0x3d   : > { %793 = vst [vmem:[%s3385_s11 + $0x120] sm:$0xff] %v792_v4  ;;  %795 = vst [vmem:[%s3385_s11 + $0x128] sm:$0xff] %v794_v5  ;;  %v798_v7 = vld [vmem:[%s3380_s16 + $0x238] sm:$0xff]  ;;  %v800_v8 = vld [vmem:[%s3380_s16 + $0x240] sm:$0xff] }
  0x3e   : > { %797 = vst [vmem:[%s3385_s11 + $0x130] sm:$0xff] %v796_v6  ;;  %v802_v9 = vld [vmem:[%s3380_s16 + $0x248] sm:$0xff]  ;;  %799 = vst [vmem:[%s3385_s11 + $0x138] sm:$0xff] %v798_v7  ;;  %v804_v10 = vld [vmem:[%s3380_s16 + $0x250] sm:$0xff] }
  0x3f   : > { %801 = vst [vmem:[%s3385_s11 + $0x140] sm:$0xff] %v800_v8  ;;  %803 = vst [vmem:[%s3385_s11 + $0x148] sm:$0xff] %v802_v9  ;;  %v806_v11 = vld [vmem:[%s3380_s16 + $0x258] sm:$0xff]  ;;  %v808_v12 = vld [vmem:[%s3380_s16 + $0x260] sm:$0xff] }
  0x40   : > { %805 = vst [vmem:[%s3385_s11 + $0x150] sm:$0xff] %v804_v10  ;;  %807 = vst [vmem:[%s3385_s11 + $0x158] sm:$0xff] %v806_v11  ;;  %v810_v13 = vld [vmem:[%s3380_s16 + $0x268] sm:$0xff]  ;;  %v812_v14 = vld [vmem:[%s3380_s16 + $0x270] sm:$0xff] }
  0x41   : > { %809 = vst [vmem:[%s3385_s11 + $0x160] sm:$0xff] %v808_v12  ;;  %v814_v15 = vld [vmem:[%s3380_s16 + $0x278] sm:$0xff]  ;;  %811 = vst [vmem:[%s3385_s11 + $0x168] sm:$0xff] %v810_v13  ;;  %v816_v16 = vld [vmem:[%s3380_s16 + $0x280] sm:$0xff] }
  0x42   : > { %813 = vst [vmem:[%s3385_s11 + $0x170] sm:$0xff] %v812_v14  ;;  %815 = vst [vmem:[%s3385_s11 + $0x178] sm:$0xff] %v814_v15  ;;  %v818_v17 = vld [vmem:[%s3380_s16 + $0x288] sm:$0xff]  ;;  %v820_v18 = vld [vmem:[%s3380_s16 + $0x290] sm:$0xff] }
  0x43   : > { %817 = vst [vmem:[%s3385_s11 + $0x180] sm:$0xff] %v816_v16  ;;  %819 = vst [vmem:[%s3385_s11 + $0x188] sm:$0xff] %v818_v17  ;;  %v822_v19 = vld [vmem:[%s3380_s16 + $0x298] sm:$0xff]  ;;  %v824_v20 = vld [vmem:[%s3380_s16 + $0x2a0] sm:$0xff] }
  0x44   : > { %821 = vst [vmem:[%s3385_s11 + $0x190] sm:$0xff] %v820_v18  ;;  %v826_v21 = vld [vmem:[%s3380_s16 + $0x2a8] sm:$0xff]  ;;  %823 = vst [vmem:[%s3385_s11 + $0x198] sm:$0xff] %v822_v19  ;;  %v828_v22 = vld [vmem:[%s3380_s16 + $0x2b0] sm:$0xff] }
  0x45   : > { %825 = vst [vmem:[%s3385_s11 + $0x1a0] sm:$0xff] %v824_v20  ;;  %827 = vst [vmem:[%s3385_s11 + $0x1a8] sm:$0xff] %v826_v21  ;;  %v830_v23 = vld [vmem:[%s3380_s16 + $0x2b8] sm:$0xff]  ;;  %v832_v24 = vld [vmem:[%s3380_s16 + $0x2c0] sm:$0xff] }
  0x46   : > { %829 = vst [vmem:[%s3385_s11 + $0x1b0] sm:$0xff] %v828_v22  ;;  %831 = vst [vmem:[%s3385_s11 + $0x1b8] sm:$0xff] %v830_v23  ;;  %v834_v25 = vld [vmem:[%s3380_s16 + $0x2c8] sm:$0xff]  ;;  %v836_v26 = vld [vmem:[%s3380_s16 + $0x2d0] sm:$0xff] }
  0x47   : > { %833 = vst [vmem:[%s3385_s11 + $0x1c0] sm:$0xff] %v832_v24  ;;  %v838_v27 = vld [vmem:[%s3380_s16 + $0x2d8] sm:$0xff]  ;;  %835 = vst [vmem:[%s3385_s11 + $0x1c8] sm:$0xff] %v834_v25  ;;  %v840_v28 = vld [vmem:[%s3380_s16 + $0x2e0] sm:$0xff] }
  0x48   : > { %837 = vst [vmem:[%s3385_s11 + $0x1d0] sm:$0xff] %v836_v26  ;;  %839 = vst [vmem:[%s3385_s11 + $0x1d8] sm:$0xff] %v838_v27  ;;  %v842_v29 = vld [vmem:[%s3380_s16 + $0x2e8] sm:$0xff]  ;;  %v844_v30 = vld [vmem:[%s3380_s16 + $0x2f0] sm:$0xff] }
  0x49   : > { %841 = vst [vmem:[%s3385_s11 + $0x1e0] sm:$0xff] %v840_v28  ;;  %843 = vst [vmem:[%s3385_s11 + $0x1e8] sm:$0xff] %v842_v29  ;;  %v846_v31 = vld [vmem:[%s3380_s16 + $0x2f8] sm:$0xff] }
  0x4a   : > { %845 = vst [vmem:[%s3385_s11 + $0x1f0] sm:$0xff] %v844_v30  ;;  %847 = vst [vmem:[%s3385_s11 + $0x1f8] sm:$0xff] %v846_v31 }
  0x4b PF: > { %p2635_p11 = scmp.ge.s32.totalorder %s3191_s29, 1  ;;  %p852_p12 = scmp.lt.s32.totalorder %s3191_s29, 3 }
  0x4d   : > { %p853_p13 = pnand %p2635_p11, %p852_p12 }
  0x4e   : > { %s3515_s17 = sand.u32 (!%p853_p13), 1, %s3175_s25   ;;  %s2748_s16 = sshll.u32 (!%p853_p13), %s3183_s27, 4 }
  0x4f   : > { %856 = sbr.rel (%p853_p13) target bundleno = 1009 (0x3f1), region = 119  ;;  %s2637_s18 = sshll.u32 (!%p853_p13), %s3515_s17, 9 }
  0x50   : > { %s3518_s19 = scalar_lea.vmem (!%p853_p13), [#allocation4], %s2637_s18  ;;  %s2636_s30 = sshll.u32 (!%p853_p13), %s3515_s17, 8 }
  0x51   : > { %s3591_s8 = scalar_lea.vmem (!%p853_p13), [#allocation3], %s2636_s30  ;;  %s899_s11 = scalar_lea.vmem (!%p853_p13), [#allocation5], %s3515_s17 }
  0x52   : > { %s2532_s18 = sshll.u32 (!%p853_p13), %s899_s11, 4  ;;  %s3968_s21 = scalar_lea.hbm (!%p853_p13), %s4018_s7, %s2748_s16  ;;  %s2533_s18 = int_to_ptr.vmem [resolvable:$true] %s2532_s18 }
  0x53   : > { %s2520_s22 = scalar_lea.sflag (!%p853_p13), [#allocation6], %s3515_s17  ;;  %s3115_s23 = scalar_lea.vmem (!%p853_p13), %s2533_s18, 16 }
  0x54   : > { %v3193_v32 = vmov 0   ;;  %v2657_v33 = vld [vmem:[%s3518_s19 + $0x100] sm:$0xff]  ;;  %v2658_v35 = vld [vmem:[%s3518_s19 + $0x108] sm:$0xff]  ;;  %v912_v41 = vld [vmem:[%s3518_s19 + $0x18] sm:$0xff]  ;;  %vm1253_vm0 = vcmask 130048   ;;  %vm907_vm1 = vcmask 516096   ;;  %p3116_p0 = scmp.ne.s32.totalorder %s2533_s18, %s3115_s23 }
  0x55   : > { %3108 = vset.pattern.permute.xlu1 %v3193_v32  ;;  %3107 = vset.pattern.permute.xlu0 %v3193_v32  ;;  %v909_v34 = vld [vmem:[%s3518_s19] sm:$0xff]  ;;  %v1606_v36 = vadd.f32 1.0, %v2657_v33  ;;  %v910_v38 = vld [vmem:[%s3518_s19 + $0x8] sm:$0xff]  ;;  %v1607_v39 = vadd.f32 1.0, %v2658_v35  ;;  %v911_v42 = vld [vmem:[%s3518_s19 + $0x10] sm:$0xff]  ;;  %v944_v43 = vadd.f32 1.0, %v912_v41 }
  0x56   : > { %v941_v37 = vadd.f32 1.0, %v909_v34  ;;  %v942_v40 = vadd.f32 1.0, %v910_v38  ;;  %v943_v44 = vadd.f32 1.0, %v911_v42  ;;  %v2660_v45 = vld [vmem:[%s3518_s19 + $0x118] sm:$0xff]  ;;  %v2659_v46 = vld [vmem:[%s3518_s19 + $0x110] sm:$0xff]  ;;  %v914_v49 = vld [vmem:[%s3518_s19 + $0x28] sm:$0xff]  ;;  %p3117_p1 = pnand %p3116_p0, %p3280_p5 }
  0x57   : > { %1705 = vperm.xlu1 %3108, %v1606_v36   ;;  %v1609_v47 = vadd.f32 1.0, %v2660_v45  ;;  %v1608_v48 = vadd.f32 1.0, %v2659_v46  ;;  %v913_v50 = vld [vmem:[%s3518_s19 + $0x20] sm:$0xff]  ;;  %v946_v51 = vadd.f32 1.0, %v914_v49  ;;  %v2662_v53 = vld [vmem:[%s3518_s19 + $0x128] sm:$0xff]  ;;  %v916_v57 = vld [vmem:[%s3518_s19 + $0x38] sm:$0xff] }
  0x58   : > { %1039 = vperm.xlu0 %3107, %v941_v37   ;;  %v945_v52 = vadd.f32 1.0, %v913_v50  ;;  %v2661_v54 = vld [vmem:[%s3518_s19 + $0x120] sm:$0xff]  ;;  %v1611_v55 = vadd.f32 1.0, %v2662_v53  ;;  %v915_v58 = vld [vmem:[%s3518_s19 + $0x30] sm:$0xff]  ;;  %v948_v60 = vadd.f32 1.0, %v916_v57  ;;  %v2664_v63 = vld [vmem:[%s3518_s19 + $0x138] sm:$0xff]  ;;  %p3118_p2 = pneg %p3117_p1 }
  0x59   : > { %v1610_v56 = vadd.f32 1.0, %v2661_v54  ;;  %v3109_v59 = vld [vmem:[%s4013_s2] sm:$0xff]   ;;  %v947_v61 = vadd.f32 1.0, %v915_v58  ;;  %v3110_v62 = vld [vmem:[%s4013_s2 + $0x8] sm:$0xff]   ;;  %v2663_v0 = vld [vmem:[%s3518_s19 + $0x130] sm:$0xff]  ;;  %v1613_v1 = vadd.f32 1.0, %v2664_v63 }
  0x5a   : > { %2957 = vmatprep.subr.bf16.mxu0 %v3109_v59  ;;  %2991 = vmatprep.subr.bf16.mxu1 %v3110_v62  ;;  %v1612_v2 = vadd.f32 1.0, %v2663_v0  ;;  %v918_v3 = vld [vmem:[%s3518_s19 + $0x48] sm:$0xff]  ;;  %v917_v4 = vld [vmem:[%s3518_s19 + $0x40] sm:$0xff]  ;;  %v920_v11 = vld [vmem:[%s3518_s19 + $0x58] sm:$0xff]  ;;  %vm3195_vm2 = vmmov 0   ;;  %vm2438_vm3 = vcmask 1043456  }
  0x5b   : > { %1710 = vperm.xlu1 %3108, %v1607_v39   ;;  %2958 = vmatpush3.bf16.msra.mxu0 %v3109_v59  ;;  %v950_v5 = vadd.f32 1.0, %v918_v3  ;;  %v949_v6 = vadd.f32 1.0, %v917_v4  ;;  %v2666_v7 = vld [vmem:[%s3518_s19 + $0x148] sm:$0xff]  ;;  %v2665_v8 = vld [vmem:[%s3518_s19 + $0x140] sm:$0xff]  ;;  %v919_v12 = vld [vmem:[%s3518_s19 + $0x50] sm:$0xff]  ;;  %v952_v13 = vadd.f32 1.0, %v920_v11 }
  0x5c   : > { %1044 = vperm.xlu0 %3107, %v942_v40   ;;  %2992 = vmatpush3.bf16.msra.mxu1 %v3110_v62  ;;  %v1615_v9 = vadd.f32 1.0, %v2666_v7  ;;  %v1614_v10 = vadd.f32 1.0, %v2665_v8  ;;  %v951_v14 = vadd.f32 1.0, %v919_v12  ;;  %v2668_v15 = vld [vmem:[%s3518_s19 + $0x158] sm:$0xff]  ;;  %v2667_v16 = vld [vmem:[%s3518_s19 + $0x150] sm:$0xff]  ;;  %v922_v19 = vld [vmem:[%s3518_s19 + $0x68] sm:$0xff] }
  0x5d   : > { %v1617_v17 = vadd.f32 1.0, %v2668_v15  ;;  %v1616_v18 = vadd.f32 1.0, %v2667_v16  ;;  %v921_v20 = vld [vmem:[%s3518_s19 + $0x60] sm:$0xff]  ;;  %v954_v21 = vadd.f32 1.0, %v922_v19  ;;  %v2670_v23 = vld [vmem:[%s3518_s19 + $0x168] sm:$0xff]  ;;  %v924_v27 = vld [vmem:[%s3518_s19 + $0x78] sm:$0xff] }
  0x5e   : > { %v953_v22 = vadd.f32 1.0, %v921_v20  ;;  %v2669_v24 = vld [vmem:[%s3518_s19 + $0x160] sm:$0xff]  ;;  %v1619_v25 = vadd.f32 1.0, %v2670_v23  ;;  %v923_v28 = vld [vmem:[%s3518_s19 + $0x70] sm:$0xff]  ;;  %v956_v29 = vadd.f32 1.0, %v924_v27  ;;  %v2672_v31 = vld [vmem:[%s3518_s19 + $0x178] sm:$0xff] }
  0x5f   : > { %1054 = vperm.xlu1 %3108, %v944_v43   ;;  %v1618_v26 = vadd.f32 1.0, %v2669_v24  ;;  %v955_v30 = vadd.f32 1.0, %v923_v28  ;;  %v2671_v32 = vld [vmem:[%s3518_s19 + $0x170] sm:$0xff]  ;;  %v1621_v33 = vadd.f32 1.0, %v2672_v31  ;;  %v926_v35 = vld [vmem:[%s3518_s19 + $0x88] sm:$0xff]  ;;  %v925_v36 = vld [vmem:[%s3518_s19 + $0x80] sm:$0xff] }
  0x60   : > { %1049 = vperm.xlu0 %3107, %v943_v44   ;;  %v1620_v34 = vadd.f32 1.0, %v2671_v32  ;;  %v958_v37 = vadd.f32 1.0, %v926_v35  ;;  %v957_v38 = vadd.f32 1.0, %v925_v36  ;;  %v2674_v39 = vld [vmem:[%s3518_s19 + $0x188] sm:$0xff]  ;;  %v2673_v40 = vld [vmem:[%s3518_s19 + $0x180] sm:$0xff]  ;;  %v928_v43 = vld [vmem:[%s3518_s19 + $0x98] sm:$0xff] }
  0x61   : > { %v1623_v41 = vadd.f32 1.0, %v2674_v39  ;;  %v1622_v42 = vadd.f32 1.0, %v2673_v40  ;;  %v927_v44 = vld [vmem:[%s3518_s19 + $0x90] sm:$0xff]  ;;  %v960_v45 = vadd.f32 1.0, %v928_v43  ;;  %v932_v59 = vld [vmem:[%s3518_s19 + $0xb8] sm:$0xff]  ;;  %v934_v3 = vld [vmem:[%s3518_s19 + $0xc8] sm:$0xff] }
  0x62   : > { %v959_v46 = vadd.f32 1.0, %v927_v44  ;;  %v2680_v63 = vld [vmem:[%s3518_s19 + $0x1b8] sm:$0xff]  ;;  %v2679_v0 = vld [vmem:[%s3518_s19 + $0x1b0] sm:$0xff]  ;;  %v933_v4 = vld [vmem:[%s3518_s19 + $0xc0] sm:$0xff]  ;;  %vm2274_vm4 = vcmask 523264   ;;  %vm2434_vm5 = vcmask 31744  }
  0x63   : > { %1720 = vperm.xlu1 %3108, %v1609_v47   ;;  %v2676_v47 = vld [vmem:[%s3518_s19 + $0x198] sm:$0xff]  ;;  %v2682_v7 = vld [vmem:[%s3518_s19 + $0x1c8] sm:$0xff]  ;;  %v2681_v8 = vld [vmem:[%s3518_s19 + $0x1c0] sm:$0xff]  ;;  %s3196_s30 = smov [#allocation5]  }
  0x64   : > { %1715 = vperm.xlu0 %3107, %v1608_v48   ;;  %v2675_v48 = vld [vmem:[%s3518_s19 + $0x190] sm:$0xff]  ;;  %v1625_v49 = vadd.f32 1.0, %v2676_v47  ;;  %v936_v11 = vld [vmem:[%s3518_s19 + $0xd8] sm:$0xff]  ;;  %v938_v19 = vld [vmem:[%s3518_s19 + $0xe8] sm:$0xff] }
  0x65   : > { %v1624_v50 = vadd.f32 1.0, %v2675_v48  ;;  %v935_v12 = vld [vmem:[%s3518_s19 + $0xd0] sm:$0xff]  ;;  %v2684_v15 = vld [vmem:[%s3518_s19 + $0x1d8] sm:$0xff]  ;;  %v937_v20 = vld [vmem:[%s3518_s19 + $0xe0] sm:$0xff] }
  0x66   : > { %v2683_v16 = vld [vmem:[%s3518_s19 + $0x1d0] sm:$0xff]  ;;  %v2686_v23 = vld [vmem:[%s3518_s19 + $0x1e8] sm:$0xff]  ;;  %v2685_v24 = vld [vmem:[%s3518_s19 + $0x1e0] sm:$0xff] }
  0x67   : > { %1064 = vperm.xlu1 %3108, %v946_v51   ;;  %v930_v51 = vld [vmem:[%s3518_s19 + $0xa8] sm:$0xff]  ;;  %v940_v27 = vld [vmem:[%s3518_s19 + $0xf8] sm:$0xff]  ;;  %v939_v28 = vld [vmem:[%s3518_s19 + $0xf0] sm:$0xff] }
  0x68   : > { %1059 = vperm.xlu0 %3107, %v945_v52   ;;  %v929_v52 = vld [vmem:[%s3518_s19 + $0xa0] sm:$0xff]  ;;  %v962_v53 = vadd.f32 1.0, %v930_v51  ;;  %v2688_v31 = vld [vmem:[%s3518_s19 + $0x1f8] sm:$0xff]  ;;  %v2687_v32 = vld [vmem:[%s3518_s19 + $0x1f0] sm:$0xff] }
  0x69   : > { %v961_v54 = vadd.f32 1.0, %v929_v52  ;;  %v2896_v35 = vld [vmem:[%s3591_s8 + $0x80] sm:$0xff]   ;;  %v2881_v43 = vld [vmem:[%s3591_s8 + $0x8] sm:$0xff]  }
  0x6a   : > { %v2754_v36 = vld [vmem:[%s3591_s8] sm:$0xff]   ;;  %v2819_v39 = vunpack.c.l.bf16 %v2896_v35  ;;  %v2759_v47 = vunpack.c.l.bf16 %v2881_v43  ;;  %v2897_v52 = vld [vmem:[%s3591_s8 + $0x88] sm:$0xff]  }
  0x6b   : > { %1730 = vperm.xlu1 %3108, %v1611_v55   ;;  %v2678_v55 = vld [vmem:[%s3518_s19 + $0x1a8] sm:$0xff]  ;;  %v2755_v40 = vunpack.c.l.bf16 %v2754_v36 }
  0x6c   : > { %1725 = vperm.xlu0 %3107, %v1610_v56   ;;  %v2677_v56 = vld [vmem:[%s3518_s19 + $0x1a0] sm:$0xff]  ;;  %v1627_v57 = vadd.f32 1.0, %v2678_v55 }
  0x6d   : > { %v1626_v58 = vadd.f32 1.0, %v2677_v56 }
  0x6f   : > { %1074 = vperm.xlu1 %3108, %v948_v60   ;;  %v931_v60 = vld [vmem:[%s3518_s19 + $0xb0] sm:$0xff] }
  0x70   : > { %1069 = vperm.xlu0 %3107, %v947_v61   ;;  %v964_v61 = vadd.f32 1.0, %v932_v59  ;;  %v963_v62 = vadd.f32 1.0, %v931_v60  ;;  %v2824_v59 = vunpack.c.h.bf16 %v2897_v52  ;;  %v2823_v60 = vunpack.c.l.bf16 %v2897_v52 }
  0x73   : > { %1740 = vperm.xlu1 %3108, %v1613_v1   ;;  %v1629_v1 = vadd.f32 1.0, %v2680_v63 }
  0x74   : > { %1735 = vperm.xlu0 %3107, %v1612_v2   ;;  %v1628_v2 = vadd.f32 1.0, %v2679_v0 }
  0x77   : > { %1084 = vperm.xlu1 %3108, %v950_v5   ;;  %v966_v5 = vadd.f32 1.0, %v934_v3 }
  0x78   : > { %1079 = vperm.xlu0 %3107, %v949_v6   ;;  %v965_v6 = vadd.f32 1.0, %v933_v4 }
  0x7b   : > { %1750 = vperm.xlu1 %3108, %v1615_v9   ;;  %v1631_v9 = vadd.f32 1.0, %v2682_v7 }
  0x7c   : > { %1745 = vperm.xlu0 %3107, %v1614_v10   ;;  %v1630_v10 = vadd.f32 1.0, %v2681_v8 }
  0x7f   : > { %1094 = vperm.xlu1 %3108, %v952_v13   ;;  %v968_v13 = vadd.f32 1.0, %v936_v11 }
  0x80   : > { %1089 = vperm.xlu0 %3107, %v951_v14   ;;  %v967_v14 = vadd.f32 1.0, %v935_v12 }
  0x83   : > { %1760 = vperm.xlu1 %3108, %v1617_v17   ;;  %v1633_v17 = vadd.f32 1.0, %v2684_v15 }
  0x84   : > { %1755 = vperm.xlu0 %3107, %v1616_v18   ;;  %v1632_v18 = vadd.f32 1.0, %v2683_v16 }
  0x87   : > { %1104 = vperm.xlu1 %3108, %v954_v21   ;;  %v970_v21 = vadd.f32 1.0, %v938_v19 }
  0x88   : > { %1099 = vperm.xlu0 %3107, %v953_v22   ;;  %v969_v22 = vadd.f32 1.0, %v937_v20 }
  0x8b   : > { %1770 = vperm.xlu1 %3108, %v1619_v25   ;;  %v1635_v25 = vadd.f32 1.0, %v2686_v23 }
  0x8c   : > { %1765 = vperm.xlu0 %3107, %v1618_v26   ;;  %v1634_v26 = vadd.f32 1.0, %v2685_v24 }
  0x8f   : > { %1114 = vperm.xlu1 %3108, %v956_v29   ;;  %v972_v29 = vadd.f32 1.0, %v940_v27 }
  0x90   : > { %1109 = vperm.xlu0 %3107, %v955_v30   ;;  %v971_v30 = vadd.f32 1.0, %v939_v28 }
  0x93   : > { %1780 = vperm.xlu1 %3108, %v1621_v33   ;;  %v1637_v33 = vadd.f32 1.0, %v2688_v31 }
  0x94   : > { %1775 = vperm.xlu0 %3107, %v1620_v34   ;;  %v1636_v34 = vadd.f32 1.0, %v2687_v32 }
  0x97   : > { %1124 = vperm.xlu1 %3108, %v958_v37  }
  0x98   : > { %1119 = vperm.xlu0 %3107, %v957_v38  }
  0x9b   : > { %1790 = vperm.xlu1 %3108, %v1623_v41   ;;  %v2820_v41 = vunpack.c.h.bf16 %v2896_v35 }
  0x9c   : > { %1785 = vperm.xlu0 %3107, %v1622_v42   ;;  %v2756_v42 = vunpack.c.h.bf16 %v2754_v36 }
  0x9f   : > { %1134 = vperm.xlu1 %3108, %v960_v45  }
  0xa0   : > { %1129 = vperm.xlu0 %3107, %v959_v46   ;;  %v2760_v46 = vunpack.c.h.bf16 %v2881_v43 }
  0xa3   : > { %1800 = vperm.xlu1 %3108, %v1625_v49  }
  0xa4   : > { %1795 = vperm.xlu0 %3107, %v1624_v50  }
  0xa7   : > { %1144 = vperm.xlu1 %3108, %v962_v53  }
  0xa8   : > { %1139 = vperm.xlu0 %3107, %v961_v54  }
  0xab   : > { %1810 = vperm.xlu1 %3108, %v1627_v57  }
  0xac   : > { %1805 = vperm.xlu0 %3107, %v1626_v58  }
  0xaf   : > { %1154 = vperm.xlu1 %3108, %v964_v61   ;;  %v2882_v61 = vld [vmem:[%s3591_s8 + $0x10] sm:$0xff]  }
  0xb0   : > { %1149 = vperm.xlu0 %3107, %v963_v62   ;;  %v2764_v3 = vunpack.c.h.bf16 %v2882_v61  ;;  %v2763_v4 = vunpack.c.l.bf16 %v2882_v61  ;;  %v2886_v61 = vld [vmem:[%s3591_s8 + $0x30] sm:$0xff]  }
  0xb3   : > { %1820 = vperm.xlu1 %3108, %v1629_v1  }
  0xb4   : > { %1815 = vperm.xlu0 %3107, %v1628_v2  }
  0xb7   : > { %1164 = vperm.xlu1 %3108, %v966_v5   ;;  %v2898_v5 = vld [vmem:[%s3591_s8 + $0x90] sm:$0xff]  }
  0xb8   : > { %1159 = vperm.xlu0 %3107, %v965_v6   ;;  %v2828_v11 = vunpack.c.h.bf16 %v2898_v5  ;;  %v2827_v12 = vunpack.c.l.bf16 %v2898_v5  ;;  %v2902_v5 = vld [vmem:[%s3591_s8 + $0xb0] sm:$0xff]  }
  0xbb   : > { %1830 = vperm.xlu1 %3108, %v1631_v9  }
  0xbc   : > { %1825 = vperm.xlu0 %3107, %v1630_v10  }
  0xbf   : > { %1174 = vperm.xlu1 %3108, %v968_v13   ;;  %v2883_v13 = vld [vmem:[%s3591_s8 + $0x18] sm:$0xff]  }
  0xc0   : > { %1169 = vperm.xlu0 %3107, %v967_v14   ;;  %v2768_v19 = vunpack.c.h.bf16 %v2883_v13  ;;  %v2767_v20 = vunpack.c.l.bf16 %v2883_v13  ;;  %v2887_v13 = vld [vmem:[%s3591_s8 + $0x38] sm:$0xff]  }
  0xc3   : > { %1840 = vperm.xlu1 %3108, %v1633_v17  }
  0xc4   : > { %1835 = vperm.xlu0 %3107, %v1632_v18  }
  0xc7   : > { %1184 = vperm.xlu1 %3108, %v970_v21   ;;  %v2899_v21 = vld [vmem:[%s3591_s8 + $0x98] sm:$0xff]  }
  0xc8   : > { %1179 = vperm.xlu0 %3107, %v969_v22   ;;  %v2832_v27 = vunpack.c.h.bf16 %v2899_v21  ;;  %v2831_v28 = vunpack.c.l.bf16 %v2899_v21  ;;  %v2903_v21 = vld [vmem:[%s3591_s8 + $0xb8] sm:$0xff]  }
  0xcb   : > { %1850 = vperm.xlu1 %3108, %v1635_v25  }
  0xcc   : > { %1845 = vperm.xlu0 %3107, %v1634_v26  }
  0xcf   : > { %1194 = vperm.xlu1 %3108, %v972_v29   ;;  %v2884_v29 = vld [vmem:[%s3591_s8 + $0x20] sm:$0xff]  }
  0xd0   : > { %1189 = vperm.xlu0 %3107, %v971_v30   ;;  %v2772_v35 = vunpack.c.h.bf16 %v2884_v29  ;;  %v2771_v36 = vunpack.c.l.bf16 %v2884_v29  ;;  %v2888_v29 = vld [vmem:[%s3591_s8 + $0x40] sm:$0xff]  }
  0xd2   : > { %v1706_v37 = vpop.permute.xlu1 %1705 }
  0xd3   : > { %v1040_v38 = vpop.permute.xlu0 %1039  ;;  %1860 = vperm.xlu1 %3108, %v1637_v33   ;;  %v1863_v48 = vmul.f32 %v2819_v39, %v1706_v37  ;;  %v2900_v37 = vld [vmem:[%s3591_s8 + $0xa0] sm:$0xff]  }
  0xd4   : > { %1855 = vperm.xlu0 %3107, %v1636_v34   ;;  %v1197_v49 = vmul.f32 %v2755_v40, %v1040_v38  ;;  %v2836_v43 = vunpack.c.h.bf16 %v2900_v37 }
  0xd6   : > { %v1711_v44 = vpop.permute.xlu1 %1710 }
  0xd7   : > { %v1045_v45 = vpop.permute.xlu0 %1044  ;;  %v1864_v50 = vmul.f32 %v2820_v41, %v1711_v44  ;;  %v2835_v44 = vunpack.c.l.bf16 %v2900_v37  ;;  %v2904_v37 = vld [vmem:[%s3591_s8 + $0xc0] sm:$0xff]  }
  0xd8   : > { %v1198_v51 = vmul.f32 %v2756_v42, %v1045_v45  ;;  %v2885_v45 = vld [vmem:[%s3591_s8 + $0x28] sm:$0xff]  }
  0xd9   : > { %v1895_v54 = vpack.c.bf16 %v1864_v50, %v1863_v48  ;;  %v2775_v52 = vunpack.c.l.bf16 %v2885_v45 }
  0xda   : > { %v1229_v53 = vpack.c.bf16 %v1198_v51, %v1197_v49  ;;  %v1055_v55 = vpop.permute.xlu1 %1054  ;;  %v2776_v51 = vunpack.c.h.bf16 %v2885_v45  ;;  %v2889_v45 = vld [vmem:[%s3591_s8 + $0x48] sm:$0xff]  }
  0xdb   : > { %v1050_v56 = vpop.permute.xlu0 %1049  ;;  %v1200_v57 = vmul.f32 %v2760_v46, %v1055_v55  ;;  %2993 = vmatprep.mubr.msk.bf16.mxu1 %vm1253_vm0, %v1895_v54 }
  0xdc   : > { %v1199_v58 = vmul.f32 %v2759_v47, %v1050_v56  ;;  %2959 = vmatprep.mubr.msk.bf16.mxu0 %vm1253_vm0, %v1229_v53  ;;  %v2901_v53 = vld [vmem:[%s3591_s8 + $0xa8] sm:$0xff]  }
  0xde   : > { %v1230_v62 = vpack.c.bf16 %v1200_v57, %v1199_v58  ;;  %v1721_v63 = vpop.permute.xlu1 %1720 }
  0xdf   : > { %v1716_v0 = vpop.permute.xlu0 %1715  ;;  %v1866_v1 = vmul.f32 %v2824_v59, %v1721_v63  ;;  %v2840_v59 = vunpack.c.h.bf16 %v2901_v53 }
  0xe0   : > { %v1865_v2 = vmul.f32 %v2823_v60, %v1716_v0  ;;  %2960 = vmatmul.mubr.msk.bf16.vlgmr.msra.gmra.mxu0 %vm1253_vm0, %v1230_v62  ;;  %v2839_v60 = vunpack.c.l.bf16 %v2901_v53  ;;  %v2905_v53 = vld [vmem:[%s3591_s8 + $0xc8] sm:$0xff]  }
  0xe2   : > { %v1896_v6 = vpack.c.bf16 %v1866_v1, %v1865_v2  ;;  %v1065_v7 = vpop.permute.xlu1 %1064 }
  0xe3   : > { %v1060_v8 = vpop.permute.xlu0 %1059  ;;  %v1202_v9 = vmul.f32 %v2764_v3, %v1065_v7  ;;  %v2780_v3 = vunpack.c.h.bf16 %v2886_v61 }
  0xe4   : > { %v1201_v10 = vmul.f32 %v2763_v4, %v1060_v8  ;;  %2994 = vmatmul.mubr.msk.bf16.vlgmr.msra.gmra.mxu1 %vm1253_vm0, %v1896_v6  ;;  %v2779_v4 = vunpack.c.l.bf16 %v2886_v61  ;;  %v2890_v61 = vld [vmem:[%s3591_s8 + $0x50] sm:$0xff]  }
  0xe6   : > { %v1231_v14 = vpack.c.bf16 %v1202_v9, %v1201_v10  ;;  %v1731_v15 = vpop.permute.xlu1 %1730 }
  0xe7   : > { %v1726_v16 = vpop.permute.xlu0 %1725  ;;  %v1868_v17 = vmul.f32 %v2828_v11, %v1731_v15  ;;  %v2844_v11 = vunpack.c.h.bf16 %v2902_v5 }
  0xe8   : > { %v1867_v18 = vmul.f32 %v2827_v12, %v1726_v16  ;;  %2963 = vmatprep.mubr.msk.bf16.mxu0 %vm1253_vm0, %v1231_v14  ;;  %v2843_v12 = vunpack.c.l.bf16 %v2902_v5  ;;  %v2906_v5 = vld [vmem:[%s3591_s8 + $0xd0] sm:$0xff]  }
  0xea   : > { %v1897_v22 = vpack.c.bf16 %v1868_v17, %v1867_v18  ;;  %v1075_v23 = vpop.permute.xlu1 %1074 }
  0xeb   : > { %v1070_v24 = vpop.permute.xlu0 %1069  ;;  %v1204_v25 = vmul.f32 %v2768_v19, %v1075_v23  ;;  %v2784_v19 = vunpack.c.h.bf16 %v2887_v13 }
  0xec   : > { %v1203_v26 = vmul.f32 %v2767_v20, %v1070_v24  ;;  %2997 = vmatprep.mubr.msk.bf16.mxu1 %vm1253_vm0, %v1897_v22  ;;  %v2783_v20 = vunpack.c.l.bf16 %v2887_v13  ;;  %v2891_v13 = vld [vmem:[%s3591_s8 + $0x58] sm:$0xff]  }
  0xee   : > { %v1232_v30 = vpack.c.bf16 %v1204_v25, %v1203_v26  ;;  %v1741_v31 = vpop.permute.xlu1 %1740 }
  0xef   : > { %v1736_v32 = vpop.permute.xlu0 %1735  ;;  %v1870_v33 = vmul.f32 %v2832_v27, %v1741_v31  ;;  %v2848_v27 = vunpack.c.h.bf16 %v2903_v21 }
  0xf0   : > { %v1869_v34 = vmul.f32 %v2831_v28, %v1736_v32  ;;  %2964 = vmatmul.mubr.msk.bf16.gmra.mxu0 %vm1253_vm0, %v1232_v30  ;;  %v2847_v28 = vunpack.c.l.bf16 %v2903_v21  ;;  %v2907_v21 = vld [vmem:[%s3591_s8 + $0xd8] sm:$0xff]  }
  0xf2   : > { %v1898_v38 = vpack.c.bf16 %v1870_v33, %v1869_v34  ;;  %v1085_v39 = vpop.permute.xlu1 %1084 }
  0xf3   : > { %v1080_v40 = vpop.permute.xlu0 %1079  ;;  %v1206_v41 = vmul.f32 %v2772_v35, %v1085_v39  ;;  %v2788_v35 = vunpack.c.h.bf16 %v2888_v29 }
  0xf4   : > { %v1205_v42 = vmul.f32 %v2771_v36, %v1080_v40  ;;  %2998 = vmatmul.mubr.msk.bf16.gmra.mxu1 %vm1253_vm0, %v1898_v38  ;;  %v2787_v36 = vunpack.c.l.bf16 %v2888_v29  ;;  %v2892_v29 = vld [vmem:[%s3591_s8 + $0x60] sm:$0xff]  }
  0xf6   : > { %v1233_v46 = vpack.c.bf16 %v1206_v41, %v1205_v42  ;;  %v1751_v47 = vpop.permute.xlu1 %1750 }
  0xf7   : > { %v1746_v48 = vpop.permute.xlu0 %1745  ;;  %v1872_v49 = vmul.f32 %v2836_v43, %v1751_v47  ;;  %v2852_v43 = vunpack.c.h.bf16 %v2904_v37 }
  0xf8   : > { %v1871_v50 = vmul.f32 %v2835_v44, %v1746_v48  ;;  %2967 = vmatprep.mubr.msk.bf16.mxu0 %vm1253_vm0, %v1233_v46  ;;  %v2851_v44 = vunpack.c.l.bf16 %v2904_v37  ;;  %v2908_v37 = vld [vmem:[%s3591_s8 + $0xe0] sm:$0xff]  }
  0xfa   : > { %v1899_v54 = vpack.c.bf16 %v1872_v49, %v1871_v50  ;;  %v1095_v55 = vpop.permute.xlu1 %1094 }
  0xfb   : > { %v1090_v56 = vpop.permute.xlu0 %1089  ;;  %v1208_v57 = vmul.f32 %v2776_v51, %v1095_v55  ;;  %v2792_v51 = vunpack.c.h.bf16 %v2889_v45 }
  0xfc   : > { %v1207_v58 = vmul.f32 %v2775_v52, %v1090_v56  ;;  %3001 = vmatprep.mubr.msk.bf16.mxu1 %vm1253_vm0, %v1899_v54  ;;  %v2791_v52 = vunpack.c.l.bf16 %v2889_v45  ;;  %v2893_v45 = vld [vmem:[%s3591_s8 + $0x68] sm:$0xff]  }
  0xfe   : > { %v1234_v62 = vpack.c.bf16 %v1208_v57, %v1207_v58  ;;  %v1761_v63 = vpop.permute.xlu1 %1760 }
  0xff   : > { %v1756_v0 = vpop.permute.xlu0 %1755  ;;  %v1874_v1 = vmul.f32 %v2840_v59, %v1761_v63  ;;  %v2856_v59 = vunpack.c.h.bf16 %v2905_v53 }
 0x100   : > { %v1873_v2 = vmul.f32 %v2839_v60, %v1756_v0  ;;  %2968 = vmatmul.mubr.msk.bf16.gmra.mxu0 %vm1253_vm0, %v1234_v62  ;;  %v2855_v60 = vunpack.c.l.bf16 %v2905_v53  ;;  %v2909_v53 = vld [vmem:[%s3591_s8 + $0xe8] sm:$0xff]  }
 0x102   : > { %v1900_v6 = vpack.c.bf16 %v1874_v1, %v1873_v2  ;;  %v1105_v7 = vpop.permute.xlu1 %1104 }
 0x103   : > { %v1100_v8 = vpop.permute.xlu0 %1099  ;;  %v1210_v9 = vmul.f32 %v2780_v3, %v1105_v7  ;;  %v2796_v3 = vunpack.c.h.bf16 %v2890_v61 }
 0x104   : > { %v1209_v10 = vmul.f32 %v2779_v4, %v1100_v8  ;;  %3002 = vmatmul.mubr.msk.bf16.gmra.mxu1 %vm1253_vm0, %v1900_v6  ;;  %v2795_v4 = vunpack.c.l.bf16 %v2890_v61  ;;  %v2894_v61 = vld [vmem:[%s3591_s8 + $0x70] sm:$0xff]  }
 0x106   : > { %v1235_v14 = vpack.c.bf16 %v1210_v9, %v1209_v10  ;;  %v1771_v15 = vpop.permute.xlu1 %1770 }
 0x107   : > { %v1766_v16 = vpop.permute.xlu0 %1765  ;;  %v1876_v17 = vmul.f32 %v2844_v11, %v1771_v15  ;;  %v2860_v11 = vunpack.c.h.bf16 %v2906_v5 }
 0x108   : > { %v1875_v18 = vmul.f32 %v2843_v12, %v1766_v16  ;;  %2971 = vmatprep.mubr.msk.bf16.mxu0 %vm1253_vm0, %v1235_v14  ;;  %v2859_v12 = vunpack.c.l.bf16 %v2906_v5  ;;  %v2910_v5 = vld [vmem:[%s3591_s8 + $0xf0] sm:$0xff]  }
 0x10a   : > { %v1901_v22 = vpack.c.bf16 %v1876_v17, %v1875_v18  ;;  %v1115_v23 = vpop.permute.xlu1 %1114 }
 0x10b   : > { %v1110_v24 = vpop.permute.xlu0 %1109  ;;  %v1212_v25 = vmul.f32 %v2784_v19, %v1115_v23  ;;  %v2800_v19 = vunpack.c.h.bf16 %v2891_v13 }
 0x10c   : > { %v1211_v26 = vmul.f32 %v2783_v20, %v1110_v24  ;;  %3005 = vmatprep.mubr.msk.bf16.mxu1 %vm1253_vm0, %v1901_v22  ;;  %v2799_v20 = vunpack.c.l.bf16 %v2891_v13  ;;  %v2895_v13 = vld [vmem:[%s3591_s8 + $0x78] sm:$0xff]  }
 0x10e   : > { %v1236_v30 = vpack.c.bf16 %v1212_v25, %v1211_v26  ;;  %v1781_v31 = vpop.permute.xlu1 %1780 }
 0x10f   : > { %v1776_v32 = vpop.permute.xlu0 %1775  ;;  %v1878_v33 = vmul.f32 %v2848_v27, %v1781_v31  ;;  %v2864_v27 = vunpack.c.h.bf16 %v2907_v21 }
 0x110   : > { %v1877_v34 = vmul.f32 %v2847_v28, %v1776_v32  ;;  %2972 = vmatmul.mubr.msk.bf16.gmra.mxu0 %vm1253_vm0, %v1236_v30  ;;  %v2863_v28 = vunpack.c.l.bf16 %v2907_v21  ;;  %v2911_v21 = vld [vmem:[%s3591_s8 + $0xf8] sm:$0xff]   ;;  %s3119_s8 = sshll.u32 %s3196_s30, 4  ;;  %s3120_s8 = int_to_ptr.vmem [resolvable:$false] %s3119_s8 }
 0x111   : > { %s3121_s27 = scalar_lea.vmem %s3120_s8, 32  ;;  %p3122_p3 = scmp.lt.s32.totalorder %s2533_s18, %s3120_s8 }
 0x112   : > { %v1902_v38 = vpack.c.bf16 %v1878_v33, %v1877_v34  ;;  %v1125_v39 = vpop.permute.xlu1 %1124  ;;  %p3123_p4 = scmp.lt.s32.totalorder %s3121_s27, %s3115_s23 }
 0x113   : > { %v1120_v40 = vpop.permute.xlu0 %1119  ;;  %v1214_v41 = vmul.f32 %v2788_v35, %v1125_v39  ;;  %v2804_v35 = vunpack.c.h.bf16 %v2892_v29 }
 0x114   : > { %v1213_v42 = vmul.f32 %v2787_v36, %v1120_v40  ;;  %3006 = vmatmul.mubr.msk.bf16.gmra.mxu1 %vm1253_vm0, %v1902_v38  ;;  %v2803_v36 = vunpack.c.l.bf16 %v2892_v29  ;;  %p3124_p6 = por %p3123_p4, %p3122_p3 }
 0x116   : > { %v1237_v46 = vpack.c.bf16 %v1214_v41, %v1213_v42  ;;  %v1791_v47 = vpop.permute.xlu1 %1790  ;;  %p3125_p7 = pnand %p3124_p6, %p3118_p2 }
 0x117   : > { %v1786_v48 = vpop.permute.xlu0 %1785  ;;  %v1880_v49 = vmul.f32 %v2852_v43, %v1791_v47  ;;  %v2868_v43 = vunpack.c.h.bf16 %v2908_v37 }
 0x118   : > { %v1879_v50 = vmul.f32 %v2851_v44, %v1786_v48  ;;  %2975 = vmatprep.mubr.msk.bf16.mxu0 %vm1253_vm0, %v1237_v46  ;;  %v2867_v44 = vunpack.c.l.bf16 %v2908_v37  ;;  %v2357_v37 = vld [vmem:[%s4016_s5 + $0x30] sm:$0xff] }
 0x11a   : > { %v1903_v54 = vpack.c.bf16 %v1880_v49, %v1879_v50  ;;  %v1135_v55 = vpop.permute.xlu1 %1134 }
 0x11b   : > { %v1130_v56 = vpop.permute.xlu0 %1129  ;;  %v1216_v57 = vmul.f32 %v2792_v51, %v1135_v55  ;;  %v2808_v51 = vunpack.c.h.bf16 %v2893_v45 }
 0x11c   : > { %v1215_v58 = vmul.f32 %v2791_v52, %v1130_v56  ;;  %3009 = vmatprep.mubr.msk.bf16.mxu1 %vm1253_vm0, %v1903_v54  ;;  %v2807_v52 = vunpack.c.l.bf16 %v2893_v45 }
 0x11e   : > { %v1238_v62 = vpack.c.bf16 %v1216_v57, %v1215_v58  ;;  %v1801_v63 = vpop.permute.xlu1 %1800 }
 0x11f   : > { %v1796_v0 = vpop.permute.xlu0 %1795  ;;  %v1882_v1 = vmul.f32 %v2856_v59, %v1801_v63  ;;  %v2872_v59 = vunpack.c.h.bf16 %v2909_v53 }
 0x120   : > { %v1881_v2 = vmul.f32 %v2855_v60, %v1796_v0  ;;  %2976 = vmatmul.mubr.msk.bf16.gmra.mxu0 %vm1253_vm0, %v1238_v62  ;;  %v2871_v60 = vunpack.c.l.bf16 %v2909_v53 }
 0x122   : > { %v1904_v6 = vpack.c.bf16 %v1882_v1, %v1881_v2  ;;  %v1145_v7 = vpop.permute.xlu1 %1144 }
 0x123   : > { %v1140_v8 = vpop.permute.xlu0 %1139  ;;  %v1218_v9 = vmul.f32 %v2796_v3, %v1145_v7  ;;  %v2812_v3 = vunpack.c.h.bf16 %v2894_v61 }
 0x124   : > { %v1217_v10 = vmul.f32 %v2795_v4, %v1140_v8  ;;  %3010 = vmatmul.mubr.msk.bf16.gmra.mxu1 %vm1253_vm0, %v1904_v6  ;;  %v2811_v4 = vunpack.c.l.bf16 %v2894_v61 }
 0x126   : > { %v1239_v14 = vpack.c.bf16 %v1218_v9, %v1217_v10  ;;  %v1811_v15 = vpop.permute.xlu1 %1810 }
 0x127   : > { %v1806_v16 = vpop.permute.xlu0 %1805  ;;  %v1884_v17 = vmul.f32 %v2860_v11, %v1811_v15  ;;  %v2876_v11 = vunpack.c.h.bf16 %v2910_v5 }
 0x128   : > { %v1883_v18 = vmul.f32 %v2859_v12, %v1806_v16  ;;  %2979 = vmatprep.mubr.msk.bf16.mxu0 %vm1253_vm0, %v1239_v14  ;;  %v2875_v12 = vunpack.c.l.bf16 %v2910_v5 }
 0x12a   : > { %v1905_v22 = vpack.c.bf16 %v1884_v17, %v1883_v18  ;;  %v1155_v23 = vpop.permute.xlu1 %1154 }
 0x12b   : > { %v1150_v24 = vpop.permute.xlu0 %1149  ;;  %v1220_v25 = vmul.f32 %v2800_v19, %v1155_v23  ;;  %v2816_v19 = vunpack.c.h.bf16 %v2895_v13 }
 0x12c   : > { %v1219_v26 = vmul.f32 %v2799_v20, %v1150_v24  ;;  %3013 = vmatprep.mubr.msk.bf16.mxu1 %vm1253_vm0, %v1905_v22  ;;  %v2815_v20 = vunpack.c.l.bf16 %v2895_v13 }
 0x12e   : > { %v1240_v30 = vpack.c.bf16 %v1220_v25, %v1219_v26  ;;  %v1821_v31 = vpop.permute.xlu1 %1820 }
 0x12f   : > { %v1816_v32 = vpop.permute.xlu0 %1815  ;;  %v1886_v33 = vmul.f32 %v2864_v27, %v1821_v31  ;;  %v2880_v27 = vunpack.c.h.bf16 %v2911_v21 }
 0x130   : > { %v1885_v34 = vmul.f32 %v2863_v28, %v1816_v32  ;;  %2980 = vmatmul.mubr.msk.bf16.gmra.mxu0 %vm1253_vm0, %v1240_v30  ;;  %v2879_v28 = vunpack.c.l.bf16 %v2911_v21 }
 0x132   : > { %v1906_v38 = vpack.c.bf16 %v1886_v33, %v1885_v34  ;;  %v1165_v39 = vpop.permute.xlu1 %1164 }
 0x133   : > { %v1160_v40 = vpop.permute.xlu0 %1159  ;;  %v1222_v41 = vmul.f32 %v2804_v35, %v1165_v39  ;;  %v3194_v35 = vmov 0.0   ;;  %v2355_v39 = vld [vmem:[%s4016_s5 + $0x20] sm:$0xff] }
 0x134   : > { %v1221_v42 = vmul.f32 %v2803_v36, %v1160_v40  ;;  %3014 = vmatmul.mubr.msk.bf16.gmra.mxu1 %vm1253_vm0, %v1906_v38  ;;  %3025 = vmatprep.subr.mxu0 %v3194_v35  ;;  %v2358_v36 = vld [vmem:[%s4016_s5 + $0x38] sm:$0xff]  ;;  %v2356_v38 = vld [vmem:[%s4016_s5 + $0x28] sm:$0xff]  ;;  %908 = vst.msk [vmem:[#allocation2] sm:$0x1] %vm907_vm1, %v3194_v35 }
 0x135   : > { %3044 = vmatprep.subr.mxu1 %v3194_v35  ;;  %3026 = vmatpush3.msra.mxu0 %v2358_v36 }
 0x136   : > { %v1241_v46 = vpack.c.bf16 %v1222_v41, %v1221_v42  ;;  %v1831_v47 = vpop.permute.xlu1 %1830  ;;  %3027 = vmatprep.subr.mxu0 %v3194_v35 }
 0x137   : > { %v1826_v48 = vpop.permute.xlu0 %1825  ;;  %v1888_v49 = vmul.f32 %v2868_v43, %v1831_v47  ;;  %3028 = vmatpush3.msra.mxu0 %v2357_v37  ;;  %v2353_v47 = vld [vmem:[%s4016_s5 + $0x10] sm:$0xff] }
 0x138   : > { %v1887_v50 = vmul.f32 %v2867_v44, %v1826_v48  ;;  %2983 = vmatprep.mubr.msk.bf16.mxu0 %vm1253_vm0, %v1241_v46  ;;  %3029 = vmatprep.subr.mxu0 %v3194_v35  ;;  %v2354_v46 = vld [vmem:[%s4016_s5 + $0x18] sm:$0xff] }
 0x139   : > { %3030 = vmatpush3.msra.mxu0 %v2356_v38 }
 0x13a   : > { %v1907_v54 = vpack.c.bf16 %v1888_v49, %v1887_v50  ;;  %v1175_v55 = vpop.permute.xlu1 %1174  ;;  %3031 = vmatprep.subr.mxu0 %v3194_v35  ;;  %v2352_v49 = vld [vmem:[%s4016_s5 + $0x8] sm:$0xff] }
 0x13b   : > { %v1170_v56 = vpop.permute.xlu0 %1169  ;;  %v1224_v57 = vmul.f32 %v2808_v51, %v1175_v55  ;;  %3032 = vmatpush3.msra.mxu0 %v2355_v39  ;;  %v2433_v55 = vld [vmem:[%s4017_s6] sm:$0xf] }
 0x13c   : > { %v1223_v58 = vmul.f32 %v2807_v52, %v1170_v56  ;;  %3017 = vmatprep.mubr.msk.bf16.mxu1 %vm1253_vm0, %v1907_v54  ;;  %3033 = vmatprep.subr.mxu0 %v3194_v35  ;;  %v2351_v52 = vld [vmem:[%s4016_s5] sm:$0xff] }
 0x13d   : > { %3034 = vmatpush3.msra.mxu0 %v2354_v46  ;;  %3045 = vmatpush3.msk.msra.mxu1 %vm2438_vm3, %v2433_v55 }
 0x13e   : > { %v1242_v62 = vpack.c.bf16 %v1224_v57, %v1223_v58  ;;  %v1841_v63 = vpop.permute.xlu1 %1840  ;;  %3035 = vmatprep.subr.mxu0 %v3194_v35 }
 0x13f   : > { %v1836_v0 = vpop.permute.xlu0 %1835  ;;  %v1890_v1 = vmul.f32 %v2872_v59, %v1841_v63  ;;  %3036 = vmatpush3.msra.mxu0 %v2353_v47 }
 0x140   : > { %v1889_v2 = vmul.f32 %v2871_v60, %v1836_v0  ;;  %2984 = vmatmul.mubr.msk.bf16.gmra.mxu0 %vm1253_vm0, %v1242_v62  ;;  %3037 = vmatprep.subr.mxu0 %v3194_v35 }
 0x141   : > { %3038 = vmatpush3.msra.mxu0 %v2352_v49 }
 0x142   : > { %v1908_v6 = vpack.c.bf16 %v1890_v1, %v1889_v2  ;;  %v1185_v7 = vpop.permute.xlu1 %1184  ;;  %3039 = vmatprep.subr.mxu0 %v3194_v35  ;;  %v3690_v2 = vld [vmem:[%s4014_s3 + $0x1] ss:$0 sm:$0xff] }
 0x143   : > { %v1180_v8 = vpop.permute.xlu0 %1179  ;;  %v1226_v9 = vmul.f32 %v2812_v3, %v1185_v7  ;;  %3040 = vmatpush3.msra.mxu0 %v2351_v52  ;;  %v3695_v3 = vld [vmem:[%s4014_s3] ss:$0 sm:$0xff] }
 0x144   : > { %v1225_v10 = vmul.f32 %v2811_v4, %v1180_v8  ;;  %3018 = vmatmul.mubr.msk.bf16.gmra.mxu1 %vm1253_vm0, %v1908_v6  ;;  %v3706_v8 = vld [vmem:[%s4015_s4 + $0x1] ss:$0 sm:$0xff] }
 0x146   : > { %v1243_v14 = vpack.c.bf16 %v1226_v9, %v1225_v10  ;;  %v1851_v15 = vpop.permute.xlu1 %1850  ;;  %v3713_v10 = vld [vmem:[%s4015_s4] ss:$0 sm:$0xff] }
 0x147   : > { %v1846_v16 = vpop.permute.xlu0 %1845  ;;  %v1892_v17 = vmul.f32 %v2876_v11, %v1851_v15 }
 0x148   : > { %v1891_v18 = vmul.f32 %v2875_v12, %v1846_v16  ;;  %2987 = vmatprep.mubr.msk.bf16.mxu0 %vm1253_vm0, %v1243_v14 }
 0x14a   : > { %v1909_v22 = vpack.c.bf16 %v1892_v17, %v1891_v18  ;;  %v1195_v23 = vpop.permute.xlu1 %1194 }
 0x14b   : > { %v1190_v24 = vpop.permute.xlu0 %1189  ;;  %v1228_v25 = vmul.f32 %v2816_v19, %v1195_v23 }
 0x14c   : > { %v1227_v26 = vmul.f32 %v2815_v20, %v1190_v24  ;;  %3021 = vmatprep.mubr.msk.bf16.mxu1 %vm1253_vm0, %v1909_v22 }
 0x14e   : > { %v1244_v29 = vpack.c.bf16 %v1228_v25, %v1227_v26  ;;  %v1861_v30 = vpop.permute.xlu1 %1860 }
 0x14f   : > { %v1856_v31 = vpop.permute.xlu0 %1855  ;;  %v1894_v32 = vmul.f32 %v2880_v27, %v1861_v30 }
 0x150   : > { %v1893_v33 = vmul.f32 %v2879_v28, %v1856_v31  ;;  %2988 = vmatmul.mubr.msk.bf16.gmra.mxu0 %vm1253_vm0, %v1244_v29 }
 0x151   : > { %3041 = vmatprep.mubr.msk.f32.mxu0 %vm3195_vm2, %v3194_v35 }
 0x152   : > { %v1910_v34 = vpack.c.bf16 %v1894_v32, %v1893_v33 }
 0x154   : > { %3022 = vmatmul.mubr.msk.bf16.gmra.mxu1 %vm1253_vm0, %v1910_v34 }
 0x155   : > { %3046 = vmatprep.mubr.msk.f32.mxu1 %vm3195_vm2, %v3194_v35 }
 0x1a0   : > { %v2961_v40 = vpop.f32.mrf.mxu0 }
 0x1a1   : > { %v1472_v7 = vmul.f32 %v2961_v40, %v3695_v3 }
 0x1a2   : > { %v1336_v42 = vpop.f32.mrf.mxu0 }
 0x1a3   : > { %v1470_v11 = vmul.f32 %v3695_v3, %v1336_v42  ;;  %v1511_v16 = vadd.f32 %v3713_v10, %v1472_v7 }
 0x1a4   : > { %v2995_v41 = vpop.f32.mrf.mxu1  ;;  %v2962_v44 = vpop.f32.mrf.mxu0 }
 0x1a5   : > { %v2139_v6 = vmul.f32 %v2995_v41, %v3690_v2  ;;  %v1473_v13 = vmul.f32 %v2962_v44, %v3695_v3  ;;  %v1509_v18 = vadd.f32 %v3713_v10, %v1470_v11  ;;  %v1543_v24 = vmax.f32 %v1511_v16, 0.0 }
 0x1a6   : > { %v2002_v43 = vpop.f32.mrf.mxu1  ;;  %v1339_v48 = vpop.f32.mrf.mxu0 }
 0x1a7   : > { %v2179_v14 = vadd.f32 %v3706_v8, %v2139_v6  ;;  %v1471_v19 = vmul.f32 %v3695_v3, %v1339_v48  ;;  %v3728_v20 = vadd.f32 %v3713_v10, %v1473_v13  ;;  %v2137_v22 = vmul.f32 %v3690_v2, %v2002_v43 }
 0x1a8   : > { %v2996_v45 = vpop.f32.mrf.mxu1  ;;  %v1541_v28 = vmax.f32 %v1509_v18, 0.0 }
 0x1a9   : > { %v2211_v21 = vmax.f32 %v2179_v14, 0.0  ;;  %v2140_v25 = vmul.f32 %v2996_v45, %v3690_v2  ;;  %v3738_v29 = vadd.f32 %v3713_v10, %v1471_v19  ;;  %v1544_v32 = vmax.f32 %v3728_v20, 0.0 }
 0x1aa   : > { %v2005_v51 = vpop.f32.mrf.mxu1  ;;  %v2177_v37 = vadd.f32 %v3706_v8, %v2137_v22 }
 0x1ab   : > { %v2138_v33 = vmul.f32 %v3690_v2, %v2005_v51  ;;  %v2243_v36 = vadd.f32 %v2211_v21, %v1543_v24  ;;  %v2180_v41 = vadd.f32 %v3706_v8, %v2140_v25  ;;  %v1542_v46 = vmax.f32 %v3738_v29, 0.0 }
 0x1ac   : > { %v2209_v55 = vmax.f32 %v2177_v37, 0.0 }
 0x1b0   : > { %v2965_v50 = vpop.f32.mrf.mxu0 }
 0x1b1   : > { %v1476_v34 = vmul.f32 %v2965_v50, %v3695_v3  ;;  %v2178_v50 = vadd.f32 %v3706_v8, %v2138_v33 }
 0x1b2   : > { %v1352_v54 = vpop.f32.mrf.mxu0 }
 0x1b3   : > { %v1474_v38 = vmul.f32 %v3695_v3, %v1352_v54  ;;  %v1515_v51 = vadd.f32 %v3713_v10, %v1476_v34  ;;  %v2210_v16 = vmax.f32 %v2178_v50, 0.0 }
 0x1b4   : > { %v2999_v53 = vpop.f32.mrf.mxu1  ;;  %v2966_v57 = vpop.f32.mrf.mxu0 }
 0x1b5   : > { %v2143_v26 = vmul.f32 %v2999_v53, %v3690_v2  ;;  %v1477_v39 = vmul.f32 %v2966_v57, %v3695_v3  ;;  %v1547_v18 = vmax.f32 %v1515_v51, 0.0 }
 0x1b6   : > { %v2018_v56 = vpop.f32.mrf.mxu1  ;;  %v1355_v59 = vpop.f32.mrf.mxu0 }
 0x1b7   : > { %v2141_v30 = vmul.f32 %v3690_v2, %v2018_v56  ;;  %v2183_v42 = vadd.f32 %v3706_v8, %v2143_v26  ;;  %v1475_v43 = vmul.f32 %v3695_v3, %v1355_v59  ;;  %v1513_v56 = vadd.f32 %v3713_v10, %v1474_v38 }
 0x1b8   : > { %v3000_v58 = vpop.f32.mrf.mxu1  ;;  %v1516_v57 = vadd.f32 %v3713_v10, %v1477_v39  ;;  %v2241_v26 = vadd.f32 %v2209_v55, %v1541_v28  ;;  %v2242_v28 = vadd.f32 %v2210_v16, %v1542_v46 }
 0x1b9   : > { %v2144_v31 = vmul.f32 %v3000_v58, %v3690_v2  ;;  %v2181_v47 = vadd.f32 %v3706_v8, %v2141_v30  ;;  %v1545_v21 = vmax.f32 %v1513_v56, 0.0 }
 0x1ba   : > { %v2021_v61 = vpop.f32.mrf.mxu1  ;;  %v1548_v22 = vmax.f32 %v1516_v57, 0.0  ;;  %v2275_v57 = vsel %vm2274_vm4, %v2241_v26, -inf }
 0x1bb   : > { %v2142_v35 = vmul.f32 %v3690_v2, %v2021_v61  ;;  %v2184_v48 = vadd.f32 %v3706_v8, %v2144_v31  ;;  %v2212_v61 = vmax.f32 %v2180_v41, 0.0  ;;  %v2213_v7 = vmax.f32 %v2181_v47, 0.0 }
 0x1bd   : > { %v2182_v52 = vadd.f32 %v3706_v8, %v2142_v35  ;;  %v2216_v11 = vmax.f32 %v2184_v48, 0.0  ;;  %v2277_v48 = vsel %vm2274_vm4, %v2243_v36, -inf }
 0x1bf   : > { %v2214_v19 = vmax.f32 %v2182_v52, 0.0  ;;  %v2248_v33 = vadd.f32 %v2216_v11, %v1548_v22 }
 0x1c0   : > { %v2969_v60 = vpop.f32.mrf.mxu0 }
 0x1c1   : > { %v1480_v53 = vmul.f32 %v2969_v60, %v3695_v3  ;;  %v3795_v52 = vsel %vm2274_vm4, %v2248_v33, -inf }
 0x1c2   : > { %v1368_v63 = vpop.f32.mrf.mxu0 }
 0x1c3   : > { %v1478_v58 = vmul.f32 %v3695_v3, %v1368_v63  ;;  %v1519_v63 = vadd.f32 %v3713_v10, %v1480_v53 }
 0x1c4   : > { %v3003_v62 = vpop.f32.mrf.mxu1  ;;  %v3685_v1 = vpop.f32.mrf.mxu0 }
 0x1c5   : > { %v2147_v44 = vmul.f32 %v3003_v62, %v3690_v2  ;;  %v2215_v62 = vmax.f32 %v2183_v42, 0.0  ;;  %v1517_v24 = vadd.f32 %v3713_v10, %v1478_v58  ;;  %v1481_v25 = vmul.f32 %v3685_v1, %v3695_v3 }
 0x1c6   : > { %v2034_v0 = vpop.f32.mrf.mxu1  ;;  %v3699_v5 = vpop.f32.mrf.mxu0  ;;  %v1551_v39 = vmax.f32 %v1519_v63, 0.0  ;;  %v2244_v1 = vadd.f32 %v2212_v61, %v1544_v32  ;;  %v3809_v61 = vsel %vm2274_vm4, %v2242_v28, -inf }
 0x1c7   : > { %v2145_v49 = vmul.f32 %v3690_v2, %v2034_v0  ;;  %v1514_v0 = vadd.f32 %v3713_v10, %v1475_v43  ;;  %v2187_v6 = vadd.f32 %v3706_v8, %v2147_v44  ;;  %v2247_v29 = vadd.f32 %v2215_v62, %v1547_v18 }
 0x1c8   : > { %v3697_v4 = vpop.f32.mrf.mxu1  ;;  %v1479_v41 = vmul.f32 %v3695_v3, %v3699_v5  ;;  %v1549_v44 = vmax.f32 %v1517_v24, 0.0  ;;  %v1520_v47 = vadd.f32 %v3713_v10, %v1481_v25  ;;  %v3806_v58 = vsel %vm2274_vm4, %v2244_v1, -inf }
 0x1c9   : > { %v2185_v60 = vadd.f32 %v3706_v8, %v2145_v49  ;;  %v2148_v13 = vmul.f32 %v3697_v4, %v3690_v2  ;;  %v1546_v30 = vmax.f32 %v1514_v0, 0.0  ;;  %v2219_v31 = vmax.f32 %v2187_v6, 0.0 }
 0x1ca   : > { %v3716_v12 = vpop.f32.mrf.mxu1  ;;  %v2245_v4 = vadd.f32 %v2213_v7, %v1545_v21  ;;  %v2283_v49 = vsel %vm2274_vm4, %v2247_v29, -inf  ;;  %v1518_v32 = vadd.f32 %v3713_v10, %v1479_v41  ;;  %v1552_v62 = vmax.f32 %v1520_v47, 0.0 }
 0x1cb   : > { %v2217_v34 = vmax.f32 %v2185_v60, 0.0  ;;  %v2188_v35 = vadd.f32 %v3706_v8, %v2148_v13  ;;  %v2246_v38 = vadd.f32 %v2214_v19, %v1546_v30  ;;  %v2146_v42 = vmul.f32 %v3690_v2, %v3716_v12 }
 0x1cc   : > { %v2251_v50 = vadd.f32 %v2219_v31, %v1551_v39  ;;  %v2279_v51 = vsel %vm2274_vm4, %v2245_v4, -inf  ;;  %v2284_v0 = vmax.f32 %v2277_v48, %v2283_v49  ;;  %v1550_v63 = vmax.f32 %v1518_v32, 0.0 }
 0x1cd   : > { %v2249_v5 = vadd.f32 %v2217_v34, %v1549_v44  ;;  %v2220_v53 = vmax.f32 %v2188_v35, 0.0  ;;  %v3798_v55 = vsel %vm2274_vm4, %v2246_v38, -inf  ;;  %v2186_v46 = vadd.f32 %v3706_v8, %v2146_v42 }
 0x1ce   : > { %v2280_v6 = vmax.f32 %v2275_v57, %v2279_v51  ;;  %v2291_v7 = vsel %vm2274_vm4, %v2251_v50, -inf  ;;  %v2282_v13 = vmax.f32 %v3809_v61, %v3798_v55 }
 0x1cf   : > { %v2287_v16 = vsel %vm2274_vm4, %v2249_v5, -inf  ;;  %v2252_v18 = vadd.f32 %v2220_v53, %v1552_v62  ;;  %v2218_v21 = vmax.f32 %v2186_v46, 0.0 }
 0x1d0   : > { %v3708_v9 = vpop.f32.mrf.mxu0  ;;  %v3831_v31 = vmax.f32 %v2280_v6, %v2287_v16 }
 0x1d1   : > { %v1484_v11 = vmul.f32 %v3708_v9, %v3695_v3  ;;  %v3824_v9 = vmax.f32 %v2284_v0, %v2291_v7  ;;  %v2293_v35 = vsel %vm2274_vm4, %v2252_v18, -inf  ;;  %v2250_v38 = vadd.f32 %v2218_v21, %v1550_v63 }
 0x1d2   : > { %v3723_v17 = vpop.f32.mrf.mxu0 }
 0x1d3   : > { %v1523_v4 = vadd.f32 %v3713_v10, %v1484_v11  ;;  %v1482_v33 = vmul.f32 %v3695_v3, %v3723_v17  ;;  %v2289_v6 = vsel %vm2274_vm4, %v2250_v38, -inf }
 0x1d4   : > { %v3720_v15 = vpop.f32.mrf.mxu1  ;;  %v3735_v27 = vpop.f32.mrf.mxu0 }
 0x1d5   : > { %v2151_v36 = vmul.f32 %v3720_v15, %v3690_v2  ;;  %v2286_v15 = vmax.f32 %v3806_v58, %v3795_v52  ;;  %v1521_v44 = vadd.f32 %v3713_v10, %v1482_v33 }
 0x1d6   : > { %v3731_v23 = vpop.f32.mrf.mxu1  ;;  %v3755_v45 = vpop.f32.mrf.mxu0 }
 0x1d7   : > { %v2191_v22 = vadd.f32 %v3706_v8, %v2151_v36  ;;  %v2149_v24 = vmul.f32 %v3690_v2, %v3731_v23  ;;  %v1553_v7 = vmax.f32 %v1521_v44, 0.0 }
 0x1d8   : > { %v3749_v40 = vpop.f32.mrf.mxu1 }
 0x1d9   : > { %v2152_v25 = vmul.f32 %v3749_v40, %v3690_v2  ;;  %v1485_v40 = vmul.f32 %v3735_v27, %v3695_v3  ;;  %v2223_v39 = vmax.f32 %v2191_v22, 0.0  ;;  %v2189_v41 = vadd.f32 %v3706_v8, %v2149_v24 }
 0x1da   : > { %v3770_v59 = vpop.f32.mrf.mxu1 }
 0x1db   : > { %v2150_v26 = vmul.f32 %v3690_v2, %v3770_v59  ;;  %v1483_v59 = vmul.f32 %v3695_v3, %v3755_v45  ;;  %v1555_v45 = vmax.f32 %v1523_v4, 0.0  ;;  %v1524_v49 = vadd.f32 %v3713_v10, %v1485_v40 }
 0x1dc   : > { %v2221_v53 = vmax.f32 %v2189_v41, 0.0 }
 0x1dd   : > { %v2190_v42 = vadd.f32 %v3706_v8, %v2150_v26  ;;  %v2255_v5 = vadd.f32 %v2223_v39, %v1555_v45 }
 0x1de   : > { %v2253_v22 = vadd.f32 %v2221_v53, %v1553_v7 }
 0x1df   : > { %v2222_v36 = vmax.f32 %v2190_v42, 0.0 }
 0x1e0   : > { %v3765_v54 = vpop.f32.mrf.mxu0  ;;  %v2295_v58 = vsel %vm2274_vm4, %v2253_v22, -inf }
 0x1e2   : > { %v3778_v20 = vpop.f32.mrf.mxu0 }
 0x1e3   : > { %v1486_v17 = vmul.f32 %v3695_v3, %v3778_v20  ;;  %v1522_v20 = vadd.f32 %v3713_v10, %v1483_v59  ;;  %v2294_v59 = vmax.f32 %v2286_v15, %v2293_v35 }
 0x1e4   : > { %v3011_v14 = vpop.f32.mrf.mxu1  ;;  %v3788_v43 = vpop.f32.mrf.mxu0 }
 0x1e5   : > { %v2155_v29 = vmul.f32 %v3011_v14, %v3690_v2  ;;  %v1488_v14 = vmul.f32 %v3765_v54, %v3695_v3  ;;  %v1489_v51 = vmul.f32 %v3788_v43, %v3695_v3  ;;  %v1556_v43 = vmax.f32 %v1524_v49, 0.0 }
 0x1e6   : > { %v2066_v37 = vpop.f32.mrf.mxu1  ;;  %v1403_v56 = vpop.f32.mrf.mxu0 }
 0x1e7   : > { %v2153_v23 = vmul.f32 %v3690_v2, %v2066_v37  ;;  %v2192_v37 = vadd.f32 %v3706_v8, %v2152_v25  ;;  %v2195_v1 = vadd.f32 %v3706_v8, %v2155_v29  ;;  %v1527_v50 = vadd.f32 %v3713_v10, %v1488_v14 }
 0x1e8   : > { %v3012_v12 = vpop.f32.mrf.mxu1  ;;  %v1487_v32 = vmul.f32 %v3695_v3, %v1403_v56  ;;  %v1528_v21 = vadd.f32 %v3713_v10, %v1489_v51  ;;  %v2299_v56 = vsel %vm2274_vm4, %v2255_v5, -inf }
 0x1e9   : > { %v2156_v27 = vmul.f32 %v3012_v12, %v3690_v2  ;;  %v2193_v54 = vadd.f32 %v3706_v8, %v2153_v23  ;;  %v1525_v12 = vadd.f32 %v3713_v10, %v1486_v17  ;;  %v2224_v46 = vmax.f32 %v2192_v37, 0.0 }
 0x1ea   : > { %v2069_v19 = vpop.f32.mrf.mxu1  ;;  %v2227_v57 = vmax.f32 %v2195_v1, 0.0  ;;  %v1559_v63 = vmax.f32 %v1527_v50, 0.0  ;;  %v1526_v25 = vadd.f32 %v3713_v10, %v1487_v32  ;;  %v1560_v41 = vmax.f32 %v1528_v21, 0.0 }
 0x1eb   : > { %v2154_v47 = vmul.f32 %v3690_v2, %v2069_v19  ;;  %v2196_v62 = vadd.f32 %v3706_v8, %v2156_v27  ;;  %v2225_v11 = vmax.f32 %v2193_v54, 0.0  ;;  %v1554_v19 = vmax.f32 %v1522_v20, 0.0 }
 0x1ec   : > { %v1557_v24 = vmax.f32 %v1525_v12, 0.0  ;;  %v2256_v29 = vadd.f32 %v2224_v46, %v1556_v43  ;;  %v2259_v33 = vadd.f32 %v2227_v57, %v1559_v63  ;;  %v2290_v27 = vmax.f32 %v2282_v13, %v2289_v6 }
 0x1ed   : > { %v2194_v16 = vadd.f32 %v3706_v8, %v2154_v47  ;;  %v2254_v4 = vadd.f32 %v2222_v36, %v1554_v19  ;;  %v2228_v23 = vmax.f32 %v2196_v62, 0.0  ;;  %v2300_v52 = vmax.f32 %v3824_v9, %v2299_v56 }
 0x1ee   : > { %v2257_v14 = vadd.f32 %v2225_v11, %v1557_v24  ;;  %v1558_v15 = vmax.f32 %v1526_v25, 0.0  ;;  %v2296_v13 = vmax.f32 %v3831_v31, %v2295_v58 }
 0x1ef   : > { %v2226_v38 = vmax.f32 %v2194_v16, 0.0  ;;  %v2297_v45 = vsel %vm2274_vm4, %v2254_v4, -inf }
 0x1f0   : > { %v3814_v60 = vpop.f32.mrf.mxu0  ;;  %v2298_v32 = vmax.f32 %v2290_v27, %v2297_v45 }
 0x1f1   : > { %v1492_v17 = vmul.f32 %v3814_v60, %v3695_v3  ;;  %v2307_v60 = vsel %vm2274_vm4, %v2259_v33, -inf  ;;  %v2258_v54 = vadd.f32 %v2226_v38, %v1558_v15 }
 0x1f2   : > { %v1416_v34 = vpop.f32.mrf.mxu0  ;;  %v3893_v46 = vmax.f32 %v2300_v52, %v2307_v60 }
 0x1f3   : > { %v1490_v37 = vmul.f32 %v3695_v3, %v1416_v34  ;;  %v2260_v34 = vadd.f32 %v2228_v23, %v1560_v41  ;;  %v1531_v9 = vadd.f32 %v3713_v10, %v1492_v17  ;;  %v2305_v57 = vsel %vm2274_vm4, %v2258_v54, -inf }
 0x1f4   : > { %v3015_v30 = vpop.f32.mrf.mxu1  ;;  %v2982_v48 = vpop.f32.mrf.mxu0 }
 0x1f5   : > { %v2159_v39 = vmul.f32 %v3015_v30, %v3690_v2  ;;  %v2301_v30 = vsel %vm2274_vm4, %v2256_v29, -inf  ;;  %v1529_v47 = vadd.f32 %v3713_v10, %v1490_v37  ;;  %v1493_v50 = vmul.f32 %v2982_v48, %v3695_v3 }
 0x1f6   : > { %v2082_v28 = vpop.f32.mrf.mxu1  ;;  %v1419_v18 = vpop.f32.mrf.mxu0  ;;  %v2302_v12 = vmax.f32 %v2294_v59, %v2301_v30  ;;  %v2309_v31 = vsel %vm2274_vm4, %v2260_v34, -inf  ;;  %v1563_v48 = vmax.f32 %v1531_v9, 0.0 }
 0x1f7   : > { %v2157_v42 = vmul.f32 %v3690_v2, %v2082_v28  ;;  %v2303_v28 = vsel %vm2274_vm4, %v2257_v14, -inf  ;;  %v2199_v55 = vadd.f32 %v3706_v8, %v2159_v39  ;;  %v1491_v51 = vmul.f32 %v3695_v3, %v1419_v18 }
 0x1f8   : > { %v3016_v0 = vpop.f32.mrf.mxu1  ;;  %v3895_v36 = vmax.f32 %v2296_v13, %v2303_v28  ;;  %v1561_v7 = vmax.f32 %v1529_v47, 0.0  ;;  %v1532_v18 = vadd.f32 %v3713_v10, %v1493_v50  ;;  %v3909_v29 = vmax.f32 %v2302_v12, %v2309_v31 }
 0x1f9   : > { %v2160_v61 = vmul.f32 %v3016_v0, %v3690_v2  ;;  %v2197_v49 = vadd.f32 %v3706_v8, %v2157_v42  ;;  %v2231_v62 = vmax.f32 %v2199_v55, 0.0  ;;  %v1530_v43 = vadd.f32 %v3713_v10, %v1491_v51 }
 0x1fa   : > { %v2085_v40 = vpop.f32.mrf.mxu1  ;;  %v1564_v39 = vmax.f32 %v1532_v18, 0.0 }
 0x1fb   : > { %v2158_v5 = vmul.f32 %v3690_v2, %v2085_v40  ;;  %v2200_v0 = vadd.f32 %v3706_v8, %v2160_v61  ;;  %v2229_v11 = vmax.f32 %v2197_v49, 0.0  ;;  %v2263_v4 = vadd.f32 %v2231_v62, %v1563_v48 }
 0x1fc   : > { %v3912_v40 = vmax.f32 %v2298_v32, %v2305_v57  ;;  %v1562_v41 = vmax.f32 %v1530_v43, 0.0 }
 0x1fd   : > { %v2198_v19 = vadd.f32 %v3706_v8, %v2158_v5  ;;  %v2232_v33 = vmax.f32 %v2200_v0, 0.0  ;;  %v2261_v59 = vadd.f32 %v2229_v11, %v1561_v7  ;;  %v3922_v15 = vsel %vm2274_vm4, %v2263_v4, -inf }
 0x1ff   : > { %v2230_v17 = vmax.f32 %v2198_v19, 0.0  ;;  %v3927_v60 = vsel %vm2274_vm4, %v2261_v59, -inf }
 0x200   : > { %v2985_v26 = vpop.f32.mrf.mxu0 }
 0x201   : > { %v1496_v63 = vmul.f32 %v2985_v26, %v3695_v3  ;;  %v2262_v61 = vadd.f32 %v2230_v17, %v1562_v41 }
 0x202   : > { %v1432_v35 = vpop.f32.mrf.mxu0 }
 0x203   : > { %v1494_v23 = vmul.f32 %v3695_v3, %v1432_v35  ;;  %v1535_v37 = vadd.f32 %v3713_v10, %v1496_v63  ;;  %v2264_v35 = vadd.f32 %v2232_v33, %v1564_v39  ;;  %v2313_v33 = vsel %vm2274_vm4, %v2262_v61, -inf }
 0x204   : > { %v3019_v1 = vpop.f32.mrf.mxu1  ;;  %v2986_v53 = vpop.f32.mrf.mxu0 }
 0x205   : > { %v1497_v56 = vmul.f32 %v2986_v53, %v3695_v3  ;;  %v2163_v22 = vmul.f32 %v3019_v1, %v3690_v2  ;;  %v1533_v30 = vadd.f32 %v3713_v10, %v1494_v23  ;;  %v1567_v13 = vmax.f32 %v1535_v37, 0.0 }
 0x206   : > { %v2098_v44 = vpop.f32.mrf.mxu1  ;;  %v1435_v21 = vpop.f32.mrf.mxu0  ;;  %v2317_v11 = vsel %vm2274_vm4, %v2264_v35, -inf  ;;  %v2312_v35 = vmax.f32 %v3895_v36, %v3927_v60 }
 0x207   : > { %v2161_v24 = vmul.f32 %v3690_v2, %v2098_v44  ;;  %v1495_v26 = vmul.f32 %v3695_v3, %v1435_v21  ;;  %v1536_v42 = vadd.f32 %v3713_v10, %v1497_v56  ;;  %v2203_v1 = vadd.f32 %v3706_v8, %v2163_v22 }
 0x208   : > { %v3020_v20 = vpop.f32.mrf.mxu1  ;;  %v1565_v12 = vmax.f32 %v1533_v30, 0.0  ;;  %v2318_v17 = vmax.f32 %v3909_v29, %v2317_v11 }
 0x209   : > { %v2164_v16 = vmul.f32 %v3020_v20, %v3690_v2  ;;  %v2201_v27 = vadd.f32 %v3706_v8, %v2161_v24  ;;  %v1534_v34 = vadd.f32 %v3713_v10, %v1495_v26  ;;  %v1568_v49 = vmax.f32 %v1536_v42, 0.0 }
 0x20a   : > { %v2101_v6 = vpop.f32.mrf.mxu1  ;;  %v2235_v20 = vmax.f32 %v2203_v1, 0.0 }
 0x20b   : > { %v2162_v25 = vmul.f32 %v3690_v2, %v2101_v6  ;;  %v2204_v14 = vadd.f32 %v3706_v8, %v2164_v16  ;;  %v2233_v50 = vmax.f32 %v2201_v27, 0.0  ;;  %v1566_v62 = vmax.f32 %v1534_v34, 0.0 }
 0x20c   : > { %v2267_v19 = vadd.f32 %v2235_v20, %v1567_v13 }
 0x20d   : > { %v2202_v52 = vadd.f32 %v3706_v8, %v2162_v25  ;;  %v2236_v44 = vmax.f32 %v2204_v14, 0.0  ;;  %v2265_v63 = vadd.f32 %v2233_v50, %v1565_v12 }
 0x20e   : > { %v2323_v37 = vsel %vm2274_vm4, %v2267_v19, -inf }
 0x20f   : > { %v2234_v51 = vmax.f32 %v2202_v52, 0.0  ;;  %v2268_v0 = vadd.f32 %v2236_v44, %v1568_v49 }
 0x210   : > { %v2989_v38 = vpop.f32.mrf.mxu0 }
 0x211   : > { %v1500_v45 = vmul.f32 %v2989_v38, %v3695_v3  ;;  %v2266_v21 = vadd.f32 %v2234_v51, %v1566_v62  ;;  %v2325_v23 = vsel %vm2274_vm4, %v2268_v0, -inf }
 0x212   : > { %v1448_v58 = vpop.f32.mrf.mxu0  ;;  %v2326_v30 = vmax.f32 %v2318_v17, %v2325_v23 }
 0x213   : > { %v1498_v28 = vmul.f32 %v3695_v3, %v1448_v58  ;;  %v1539_v32 = vadd.f32 %v3713_v10, %v1500_v45  ;;  %v2316_v58 = vmax.f32 %v3893_v46, %v3922_v15 }
 0x214   : > { %v2990_v54 = vpop.f32.mrf.mxu0  ;;  %v3023_v55 = vpop.f32.mrf.mxu1 }
 0x215   : > { %v1501_v9 = vmul.f32 %v2990_v54, %v3695_v3  ;;  %v2167_v47 = vmul.f32 %v3023_v55, %v3690_v2  ;;  %v1537_v6 = vadd.f32 %v3713_v10, %v1498_v28  ;;  %v1571_v22 = vmax.f32 %v1539_v32, 0.0 }
 0x216   : > { %v1451_v5 = vpop.f32.mrf.mxu0  ;;  %v2114_v53 = vpop.f32.mrf.mxu1  ;;  %v2324_v28 = vmax.f32 %v2316_v58, %v2323_v37 }
 0x217   : > { %v2207_v31 = vadd.f32 %v3706_v8, %v2167_v47  ;;  %v1499_v57 = vmul.f32 %v3695_v3, %v1451_v5  ;;  %v2165_v48 = vmul.f32 %v3690_v2, %v2114_v53  ;;  %v1540_v16 = vadd.f32 %v3713_v10, %v1501_v9  ;;  %v2273_v5 = vld [vmem:[#allocation2] sm:$0x1] }
 0x218   : > { %v3024_v7 = vpop.f32.mrf.mxu1  ;;  %v1569_v59 = vmax.f32 %v1537_v6, 0.0 }
 0x219   : > { %v2239_v18 = vmax.f32 %v2207_v31, 0.0  ;;  %v2168_v43 = vmul.f32 %v3024_v7, %v3690_v2  ;;  %v2205_v56 = vadd.f32 %v3706_v8, %v2165_v48  ;;  %v1538_v24 = vadd.f32 %v3713_v10, %v1499_v57 }
 0x21a   : > { %v2117_v3 = vpop.f32.mrf.mxu1  ;;  %v1572_v14 = vmax.f32 %v1540_v16, 0.0  ;;  %v2319_v10 = vsel %vm2274_vm4, %v2265_v63, -inf }
 0x21b   : > { %v2208_v25 = vadd.f32 %v3706_v8, %v2168_v43  ;;  %v2166_v4 = vmul.f32 %v3690_v2, %v2117_v3  ;;  %v2237_v26 = vmax.f32 %v2205_v56, 0.0  ;;  %v2271_v38 = vadd.f32 %v2239_v18, %v1571_v22 }
 0x21c   : > { %v2321_v2 = vsel %vm2274_vm4, %v2266_v21, -inf  ;;  %v1570_v1 = vmax.f32 %v1538_v24, 0.0  ;;  %v2320_v54 = vmax.f32 %v2312_v35, %v2319_v10 }
 0x21d   : > { %v2240_v39 = vmax.f32 %v2208_v25, 0.0  ;;  %v2206_v41 = vadd.f32 %v3706_v8, %v2166_v4  ;;  %v2269_v42 = vadd.f32 %v2237_v26, %v1569_v59  ;;  %v2314_v8 = vmax.f32 %v3912_v40, %v2313_v33 }
 0x21e   : > { %v2331_v29 = vsel %vm2274_vm4, %v2271_v38, -inf }
 0x21f   : > { %v2272_v27 = vadd.f32 %v2240_v39, %v1572_v14  ;;  %v2238_v52 = vmax.f32 %v2206_v41, 0.0  ;;  %v2327_v45 = vsel %vm2274_vm4, %v2269_v42, -inf  ;;  %v2322_v55 = vmax.f32 %v2314_v8, %v2321_v2 }
 0x220   : > { %v2332_v46 = vmax.f32 %v2324_v28, %v2331_v29  ;;  %v2328_v15 = vmax.f32 %v2320_v54, %v2327_v45 }
 0x221   : > { %v2333_v34 = vsel %vm2274_vm4, %v2272_v27, -inf  ;;  %v2270_v44 = vadd.f32 %v2238_v52, %v1570_v1 }
 0x222   : > { %v2334_v61 = vmax.f32 %v2326_v30, %v2333_v34 }
 0x223   : > { %v2329_v13 = vsel %vm2274_vm4, %v2270_v44, -inf }
 0x224   : > { %v2330_v9 = vmax.f32 %v2322_v55, %v2329_v13  ;;  %v2336_v36 = vmax.f32 %v2332_v46, %v2334_v61 }
 0x226   : > { %v2335_v60 = vmax.f32 %v2328_v15, %v2330_v9 }
 0x228   : > { %v2337_v40 = vmax.f32 %v2335_v60, %v2336_v36 }
 0x22a   : > { %v2338_v47 = vrot.slane %v2337_v40, 4 }
 0x22c   : > { %v2339_v49 = vmax.f32 %v2337_v40, %v2338_v47 }
 0x22e   : > { %v2340_v20 = vrot.slane %v2339_v49, 2 }
 0x230   : > { %v2341_v50 = vmax.f32 %v2339_v49, %v2340_v20 }
 0x232   : > { %v2342_v51 = vrot.slane %v2341_v50, 1 }
 0x234   : > { %v2343_v53 = vmax.f32 %v2341_v50, %v2342_v51 }
 0x236   : > { %v2344_v12 = vmax.f32 %v2273_v5, %v2343_v53 }
 0x238   : > { %2346 = vst.msk [vmem:[#allocation2] sm:$0x1] %vm907_vm1, %v2344_v12 }
 0x23f   : > { %v2350_v32 = vld [vmem:[#allocation2] sm:$0x1] }
 0x240   : > { %3042 = vmatmul.mubr.msk.f32.vlgmr.msra.gmra.mxu0 %vm2274_vm4, %v2350_v32 }
 0x300   : > { %v2428_v31 = vpop.f32.mrf.mxu0 }
 0x301   : > { %v2432_v57 = vmax.f32 %v2428_v31, 0.0 }
 0x302   : > { %v3043_v62 = vpop.f32.mrf.mxu0 }
 0x303   : > { %3047 = vmatmul.mubr.msk.f32.vlgmr.msra.gmra.mxu1 %vm2434_vm5, %v2432_v57 }
 0x3c3   : > { %v2508_v0 = vpop.f32.mrf.mxu1 }
 0x3c4   : > { %v2747_v6 = vmul.f32 -1.442695, %v2508_v0 }
 0x3c5   : > { %v3048_v48 = vpop.f32.mrf.mxu1 }
 0x3c6   : > { %3111 = vpow2.f32 %v2747_v6 }
 0x3d3   : > { %v3112_v7 = vpop.eup %3111 }
 0x3d4   : > { %v2515_v11 = vadd.f32 1.0, %v3112_v7 }
 0x3d6   : > { %3113 = vrcp.f32 %v2515_v11 }
 0x3e3   : > { %v3114_v16 = vpop.eup %3113 }
 0x3e4   : > { %2518 = vst.msk [vmem:[%s899_s11] sm:$0x1] %vm907_vm1, %v3114_v16 }
 0x3e5   : > { %3128 = shalt.err (!%p3125_p7)
}
 0x3e6   : > { %s3129_s10 = scalar_lea.hbm %s3968_s21, 16  ;;  %s3133_s16 = scalar_lea.hbm %s4018_s7, 32 }
 0x3e7   : > { %p3130_p8 = scmp.ne.s32.totalorder %s3968_s21, %s3129_s10  ;;  %p3134_p13 = scmp.lt.s32.totalorder %s3968_s21, %s4018_s7 }
 0x3e8   : > { %p3135_p0 = scmp.lt.s32.totalorder %s3133_s16, %s3129_s10 }
 0x3e9   : > { %p3131_p11 = pnand %p3130_p8, %p3280_p5 }
 0x3ea   : > { %p3136_p1 = por %p3135_p0, %p3134_p13 }
 0x3eb   : > { %p3132_p12 = pneg %p3131_p11 }
 0x3ed   : > { %p3137_p2 = pnand %p3136_p1, %p3132_p12 }
 0x3ef   : > { %3140 = shalt.err (!%p3137_p2)
}
 0x3f0   : > { %3049 = dma.vmem_to_hbm [thread:$0]  (%p3280_p5), %s2533_s18, 16, %s3968_s21, %s2520_s22  }
 0x3f1 PF: > { %s2544_s20 = sand.u32 1, %s3171_s24   ;;  %p3052_p3 = pnand %p2628_p10, %p3291_p9 }
 0x3f2   : > { %s2545_s23 = scalar_lea.sflag [#allocation6], %s2544_s20 }
 0x3f3   : > { %p3053_p4 = pneg %p3052_p3 }
 0x3f5   : > { %3166 = dma.done.wait (%p3053_p4), %s2545_s23, 16  }
 0x3f6   : > { %3168 = vsyncadd (%p3053_p4), %s2545_s23, 4294967280  ;;  %s20_s29 = sadd.s32 1, %s3191_s29   ;;  %s4022_s24 = smov %s3175_s25 }
 0x3f7   : > { %p17_p6 = scmp.ge.s32.totalorder %s20_s29, 4   ;;  %s4023_s25 = smov %s3179_s26 }
 0x3f8   : > { %s4024_s26 = smov %s3289_s14  ;;  %s4025_s27 = smov %s3187_s28 }
 0x3f9   : > { %s4026_s28 = smov %s4028_s9  ;;  %19 = sbr.rel (!%p17_p6) target bundleno = 4 (0x4), region = 188 }
 0x3fe   :  { %2549 = vsyncpa [#allocation6], 1 }
 0x3ff   :  { %2551 = vsyncpa [#allocation6 + $0x1], 1 }

</bundles_post_ra>
